<compile_context>
chip_gen: v7x
topology: tpu7x:2x2x1
jax: 0.10.0
libtpu: 0.0.40
codegen_flags: <defaults>
</compile_context>

<pallas_src>
import functools
import math

import jax
import jax.numpy as jnp
from jax.experimental import pallas as pl
from jax.experimental.pallas import tpu as pltpu

F32 = jnp.float32
MXU_DTYPE = jnp.bfloat16       # matmul operand dtype (accumulation is f32)
NEG_INF = -1e30                # finite "masked" value
LN_EPS = 1e-5                  # PyTorch nn.LayerNorm default


def _layernorm(x, g, b):
    mu = jnp.mean(x, axis=-1, keepdims=True)
    var = jnp.mean((x - mu) ** 2, axis=-1, keepdims=True)
    return (x - mu) * jax.lax.rsqrt(var + LN_EPS) * g + b


# --------------------------------- wrapper -----------------------------------

def transformer_encoder_layer(src, params, nhead, *, src_mask=None,
                              src_key_padding_mask=None, pos=None,
                              activation="relu", q_tile=256):
    """PyTorch TransformerEncoderLayer.forward (eval mode).

    src / pos : (S, N, E)  (batch_first=False, like the PyTorch module)
    src_key_padding_mask : (N, S) bool, True = padded token
    src_mask : (S, S) bool or additive float mask
    Weights use (in_features, out_features) layout (transpose of PyTorch).
    Returns (S, N, E).
    """
    S, N, E = src.shape
    F_ff = params["w1"].shape[1]
    H = nhead
    assert E % H == 0
    dh = E // H
    scale = 1.0 / math.sqrt(dh)

    # query tile: must divide S and (unless == S) be a multiple of 8
    tq = min(q_tile, S)
    if S % tq != 0 or (tq != S and tq % 8 != 0):
        tq = S
    n_q = S // tq

    has_pos = pos is not None
    has_kpm = src_key_padding_mask is not None
    has_mask = src_mask is not None

    x = jnp.transpose(src, (1, 0, 2)).astype(F32)                 # (N, S, E)

    inputs = [x]
    in_specs = [pl.BlockSpec((1, S, E), lambda b, q: (b, 0, 0))]

    if has_pos:
        inputs.append(jnp.transpose(pos, (1, 0, 2)).astype(F32))
        in_specs.append(pl.BlockSpec((1, S, E), lambda b, q: (b, 0, 0)))
    if has_kpm:
        kpm_bias = jnp.where(src_key_padding_mask, NEG_INF, 0.0)
        inputs.append(kpm_bias.astype(F32).reshape(N, 1, S))
        in_specs.append(pl.BlockSpec((1, 1, S), lambda b, q: (b, 0, 0)))
    if has_mask:
        if src_mask.dtype == jnp.bool_:
            am = jnp.where(src_mask, NEG_INF, 0.0).astype(F32)
        else:
            am = src_mask.astype(F32)
        inputs.append(am)
        in_specs.append(pl.BlockSpec(memory_space=pltpu.MemorySpace.VMEM))

    # Weights / biases: whole-array VMEM residency, single-buffered.
    vmem_full = pl.BlockSpec(memory_space=pltpu.MemorySpace.VMEM)

    def wcast(name):
        return params[name].astype(MXU_DTYPE)

    def brow(name):
        return params[name].astype(F32).reshape(1, -1)

    weight_inputs = [
        wcast("w_q"), brow("b_q"),
        wcast("w_k"), brow("b_k"),
        wcast("w_v"), brow("b_v"),
        wcast("w_o"), brow("b_o"),
        brow("ln1_g"), brow("ln1_b"),
        wcast("w1"), brow("b1"),
        wcast("w2"), brow("b2"),
        brow("ln2_g"), brow("ln2_b"),
    ]
    inputs.extend(weight_inputs)
    in_specs.extend([vmem_full] * len(weight_inputs))

    if activation == "relu":
        act_fn = lambda t: jnp.maximum(t, 0.0)
    elif activation == "gelu":
        act_fn = lambda t: jax.nn.gelu(t, approximate=True)
    else:
        raise RuntimeError(f"activation should be relu/gelu, not {activation}.")

    # ------------------------------ fused kernel -----------------------------
    def kernel(*refs):
        o_ref, k_scr, v_scr = refs[-3], refs[-2], refs[-1]
        ins = list(refs[:-3])
        src_ref = ins.pop(0)
        pos_ref = ins.pop(0) if has_pos else None
        kpm_ref = ins.pop(0) if has_kpm else None
        am_ref = ins.pop(0) if has_mask else None
        (wq, bq, wk, bk, wv, bv, wo, bo,
         g1, be1, w1, b1, w2, b2, g2, be2) = ins

        qi = pl.program_id(1)

        def mxu(a, w):
            # a: f32 activation, w: bf16 weight ref -> f32 accumulation on MXU
            return jnp.dot(a.astype(MXU_DTYPE), w[...],
                           preferred_element_type=jnp.float32)

        # --- K / V for the whole sequence, once per batch element -----------
        @pl.when(qi == 0)
        def _():
            xf = src_ref[0]                                    # (S, E) f32
            kin = xf + pos_ref[0] if has_pos else xf           # k = src + pos
            k = mxu(kin, wk) + bk[...]                         # (S, E)
            v = mxu(xf, wv) + bv[...]                          # value = src
            for h in range(H):                                 # head split -> scratch
                k_scr[h] = k[:, h * dh:(h + 1) * dh].astype(MXU_DTYPE)
                v_scr[h] = v[:, h * dh:(h + 1) * dh].astype(MXU_DTYPE)

        # --- per query tile ---------------------------------------------------
        q0 = pl.multiple_of(qi * tq, tq)
        x_t = src_ref[0, pl.ds(q0, tq), :]                     # (tq, E) f32
        q_in = x_t + pos_ref[0, pl.ds(q0, tq), :] if has_pos else x_t
        q = (mxu(q_in, wq) + bq[...]) * scale                  # scale folded into q
        qh = jnp.concatenate(
            [q[None, :, h * dh:(h + 1) * dh] for h in range(H)],
            axis=0).astype(MXU_DTYPE)                          # (H, tq, dh)

        s = jnp.einsum("hqd,hkd->hqk", qh, k_scr[...],
                       preferred_element_type=jnp.float32)     # (H, tq, S)

        # combined additive mask bias, added once
        bias = None
        if has_kpm:
            bias = kpm_ref[0]                                  # (1, S)
        if has_mask:
            m = am_ref[pl.ds(q0, tq), :]                       # (tq, S)
            bias = m if bias is None else bias + m
        if bias is not None:
            s = s + bias[None]

        # softmax (EUP reciprocal)
        s = s - jnp.max(s, axis=-1, keepdims=True)
        p = jnp.exp(s)
        p = p * pl.reciprocal(jnp.sum(p, axis=-1, keepdims=True), approx=True)

        oh = jnp.einsum("hqk,hkd->hqd", p.astype(MXU_DTYPE), v_scr[...],
                        preferred_element_type=jnp.float32)    # (H, tq, dh)
        attn = jnp.concatenate([oh[h] for h in range(H)], axis=-1)   # (tq, E)
        attn = mxu(attn, wo) + bo[...]

        # residual + LayerNorm1 (dropout1 = identity)
        y1 = _layernorm(x_t + attn, g1[...], be1[...])
        # FFN + residual + LayerNorm2 (dropout / dropout2 = identity)
        hdd = act_fn(mxu(y1, w1) + b1[...])
        y2 = mxu(hdd, w2) + b2[...]
        o_ref[0] = _layernorm(y1 + y2, g2[...], be2[...])

    # ------------------------- VMEM budget / compile --------------------------
    bpe16, bpe32 = 2, 4
    w_bytes = (4 * E * E + 2 * E * F_ff) * bpe16               # bf16 weights
    act_bytes = 2 * S * E * bpe32 * (2 if has_pos else 1)      # src(+pos), dbl-buf
    mask_bytes = (S * S * bpe32 if has_mask else 0) + (2 * S * bpe32 if has_kpm else 0)
    out_bytes = 2 * tq * E * bpe32
    scr_bytes = 2 * H * S * dh * bpe16                         # K/V scratch
    live_bytes = (3 * H * tq * S + 2 * tq * F_ff + 8 * tq * E + 2 * S * E) * bpe32
    est = w_bytes + act_bytes + mask_bytes + out_bytes + scr_bytes + live_bytes
    vmem_limit = int(min(max(int(est * 1.3) + (2 << 20), 16 << 20), 64 << 20))

    out = pl.pallas_call(
        kernel,
        out_shape=jax.ShapeDtypeStruct((N, S, E), F32),
        grid=(N, n_q),
        in_specs=in_specs,
        out_specs=pl.BlockSpec((1, tq, E), lambda b, q: (b, q, 0)),
        scratch_shapes=[pltpu.VMEM((H, S, dh), MXU_DTYPE),
                        pltpu.VMEM((H, S, dh), MXU_DTYPE)],
        compiler_params=pltpu.CompilerParams(
            dimension_semantics=("parallel", "arbitrary"),
            vmem_limit_bytes=vmem_limit),
    )(*inputs)
    return jnp.transpose(out, (1, 0, 2))                       # (S, N, E)


# -------------------------- pure-JAX reference -------------------------------

def reference_forward(src, params, nhead, *, src_mask=None,
                      src_key_padding_mask=None, pos=None):
    S, N, E = src.shape
    dh = E // nhead
    scale = 1.0 / math.sqrt(dh)
    x = jnp.transpose(src, (1, 0, 2)).astype(F32)
    qk_in = x if pos is None else x + jnp.transpose(pos, (1, 0, 2)).astype(F32)

    def mm(a, w, b):
        return jnp.einsum("nse,ef->nsf", a.astype(MXU_DTYPE),
                          w.astype(MXU_DTYPE),
                          preferred_element_type=jnp.float32) + b

    q = mm(qk_in, params["w_q"], params["b_q"])
    k = mm(qk_in, params["w_k"], params["b_k"])
    v = mm(x, params["w_v"], params["b_v"])

    def heads(t):
        return jnp.transpose(t.reshape(N, S, nhead, dh), (0, 2, 1, 3))

    qh, kh, vh = heads(q), heads(k), heads(v)
    s = jnp.einsum("nhqd,nhkd->nhqk", qh.astype(MXU_DTYPE),
                   kh.astype(MXU_DTYPE),
                   preferred_element_type=jnp.float32) * scale
    if src_key_padding_mask is not None:
        s = s + jnp.where(src_key_padding_mask, NEG_INF, 0.0)[:, None, None, :]
    if src_mask is not None:
        am = (jnp.where(src_mask, NEG_INF, 0.0)
              if src_mask.dtype == jnp.bool_ else src_mask.astype(F32))
        s = s + am[None, None]
    s = s - jnp.max(s, axis=-1, keepdims=True)
    p = jnp.exp(s)
    p = p / jnp.sum(p, axis=-1, keepdims=True)
    oh = jnp.einsum("nhqk,nhkd->nhqd", p.astype(MXU_DTYPE),
                    vh.astype(MXU_DTYPE),
                    preferred_element_type=jnp.float32)
    o = jnp.transpose(oh, (0, 2, 1, 3)).reshape(N, S, E)
    attn = mm(o, params["w_o"], params["b_o"])

    def ln(t, g, b):
        mu = jnp.mean(t, -1, keepdims=True)
        var = jnp.mean((t - mu) ** 2, -1, keepdims=True)
        return (t - mu) * jax.lax.rsqrt(var + LN_EPS) * g + b

    x = ln(x + attn, params["ln1_g"], params["ln1_b"])
    h = jnp.maximum(mm(x, params["w1"], params["b1"]), 0.0)
    y = mm(h, params["w2"], params["b2"])
    x = ln(x + y, params["ln2_g"], params["ln2_b"])
    return jnp.transpose(x, (1, 0, 2))


# ----------------------------------- demo ------------------------------------

if __name__ == "__main__":
    # Lane-dense model dims (E, F multiples of 128) per review; still small.
    d_model, nhead, dim_ff = 128, 4, 256
    S, N = 16, 2                     # sequence length, batch

    key = jax.random.PRNGKey(0)
    ks = jax.random.split(key, 16)

    def w_init(k, din, dout):
        return jax.random.normal(k, (din, dout), F32) / math.sqrt(din)

    def b_init(k, dout):
        return jax.random.normal(k, (dout,), F32) * 0.02

    params = dict(
        w_q=w_init(ks[0], d_model, d_model),  b_q=b_init(ks[1], d_model),
        w_k=w_init(ks[2], d_model, d_model),  b_k=b_init(ks[3], d_model),
        w_v=w_init(ks[4], d_model, d_model),  b_v=b_init(ks[5], d_model),
        w_o=w_init(ks[6], d_model, d_model),  b_o=b_init(ks[7], d_model),
        w1=w_init(ks[8], d_model, dim_ff),    b1=b_init(ks[9], dim_ff),
        w2=w_init(ks[10], dim_ff, d_model),   b2=b_init(ks[11], d_model),
        ln1_g=jnp.ones((d_model,), F32), ln1_b=jnp.zeros((d_model,), F32),
        ln2_g=jnp.ones((d_model,), F32), ln2_b=jnp.zeros((d_model,), F32),
    )

    src = jax.random.normal(ks[12], (S, N, d_model), F32)
    pos = jax.random.normal(ks[13], (S, N, d_model), F32) * 0.1
    pad_mask = jnp.zeros((N, S), jnp.bool_).at[1, 12:].set(True)   # True = padded
    causal = jnp.triu(jnp.ones((S, S), jnp.bool_), k=1)            # attn_mask

    def check(out, ref):
        assert out.shape == (S, N, d_model), out.shape
        assert bool(jnp.all(jnp.isfinite(out)))
        err = float(jnp.max(jnp.abs(out - ref)))
        assert bool(jnp.allclose(out, ref, atol=2e-2, rtol=2e-2)), err

    # 1) pos + key padding mask, two query tiles (tq=8)
    out = jax.block_until_ready(transformer_encoder_layer(
        src, params, nhead, src_key_padding_mask=pad_mask, pos=pos, q_tile=8))
    check(out, reference_forward(src, params, nhead,
                                 src_key_padding_mask=pad_mask, pos=pos))

    # 2) default path: no pos / no masks (statically specialized variant)
    out2 = jax.block_until_ready(
        transformer_encoder_layer(src, params, nhead, q_tile=8))
    check(out2, reference_forward(src, params, nhead))

    # 3) pos + key padding mask + boolean attn mask (combined bias path)
    out3 = jax.block_until_ready(transformer_encoder_layer(
        src, params, nhead, src_mask=causal, src_key_padding_mask=pad_mask,
        pos=pos, q_tile=8))
    check(out3, reference_forward(src, params, nhead, src_mask=causal,
                                  src_key_padding_mask=pad_mask, pos=pos))

    print("KERNEL_OK")
</pallas_src>

<mosaic_0001>
module attributes {stable_mosaic.version = 11 : i64} {
  func.func @kernel(%arg0: i32, %arg1: i32, %arg2: memref<1x16x128xf32, #tpu.memory_space<vmem>>, %arg3: memref<1x16x128xf32, #tpu.memory_space<vmem>>, %arg4: memref<1x1x16xf32, #tpu.memory_space<vmem>>, %arg5: memref<128x128xbf16, #tpu.memory_space<vmem>>, %arg6: memref<1x128xf32, #tpu.memory_space<vmem>>, %arg7: memref<128x128xbf16, #tpu.memory_space<vmem>>, %arg8: memref<1x128xf32, #tpu.memory_space<vmem>>, %arg9: memref<128x128xbf16, #tpu.memory_space<vmem>>, %arg10: memref<1x128xf32, #tpu.memory_space<vmem>>, %arg11: memref<128x128xbf16, #tpu.memory_space<vmem>>, %arg12: memref<1x128xf32, #tpu.memory_space<vmem>>, %arg13: memref<1x128xf32, #tpu.memory_space<vmem>>, %arg14: memref<1x128xf32, #tpu.memory_space<vmem>>, %arg15: memref<128x256xbf16, #tpu.memory_space<vmem>>, %arg16: memref<1x256xf32, #tpu.memory_space<vmem>>, %arg17: memref<256x128xbf16, #tpu.memory_space<vmem>>, %arg18: memref<1x128xf32, #tpu.memory_space<vmem>>, %arg19: memref<1x128xf32, #tpu.memory_space<vmem>>, %arg20: memref<1x128xf32, #tpu.memory_space<vmem>>, %arg21: memref<1x8x128xf32, #tpu.memory_space<vmem>>, %arg22: memref<4x16x32xbf16, #tpu.memory_space<vmem>>, %arg23: memref<4x16x32xbf16, #tpu.memory_space<vmem>>) attributes {dimension_semantics = [#tpu.dimension_semantics<parallel>, #tpu.dimension_semantics<arbitrary>], iteration_bounds = array<i64: 2, 2>, scalar_prefetch = 0 : i64, scratch_operands = 2 : i64, tpu.core_type = #tpu.core_type<tc>, window_params = [{transform_indices = @transform_0, window_bounds = array<i64: 1, 16, 128>}, {transform_indices = @transform_1, window_bounds = array<i64: 1, 16, 128>}, {transform_indices = @transform_2, window_bounds = array<i64: 1, 1, 16>}, {pipeline_mode = #tpu.pipeline_mode<synchronous>, transform_indices = @transform_3, window_bounds = array<i64: 128, 128>}, {pipeline_mode = #tpu.pipeline_mode<synchronous>, transform_indices = @transform_4, window_bounds = array<i64: 1, 128>}, {pipeline_mode = #tpu.pipeline_mode<synchronous>, transform_indices = @transform_5, window_bounds = array<i64: 128, 128>}, {pipeline_mode = #tpu.pipeline_mode<synchronous>, transform_indices = @transform_6, window_bounds = array<i64: 1, 128>}, {pipeline_mode = #tpu.pipeline_mode<synchronous>, transform_indices = @transform_7, window_bounds = array<i64: 128, 128>}, {pipeline_mode = #tpu.pipeline_mode<synchronous>, transform_indices = @transform_8, window_bounds = array<i64: 1, 128>}, {pipeline_mode = #tpu.pipeline_mode<synchronous>, transform_indices = @transform_9, window_bounds = array<i64: 128, 128>}, {pipeline_mode = #tpu.pipeline_mode<synchronous>, transform_indices = @transform_10, window_bounds = array<i64: 1, 128>}, {pipeline_mode = #tpu.pipeline_mode<synchronous>, transform_indices = @transform_11, window_bounds = array<i64: 1, 128>}, {pipeline_mode = #tpu.pipeline_mode<synchronous>, transform_indices = @transform_12, window_bounds = array<i64: 1, 128>}, {pipeline_mode = #tpu.pipeline_mode<synchronous>, transform_indices = @transform_13, window_bounds = array<i64: 128, 256>}, {pipeline_mode = #tpu.pipeline_mode<synchronous>, transform_indices = @transform_14, window_bounds = array<i64: 1, 256>}, {pipeline_mode = #tpu.pipeline_mode<synchronous>, transform_indices = @transform_15, window_bounds = array<i64: 256, 128>}, {pipeline_mode = #tpu.pipeline_mode<synchronous>, transform_indices = @transform_16, window_bounds = array<i64: 1, 128>}, {pipeline_mode = #tpu.pipeline_mode<synchronous>, transform_indices = @transform_17, window_bounds = array<i64: 1, 128>}, {pipeline_mode = #tpu.pipeline_mode<synchronous>, transform_indices = @transform_18, window_bounds = array<i64: 1, 128>}, {transform_indices = @transform_19, window_bounds = array<i64: 1, 8, 128>}]} {
    %c0_i32 = arith.constant 0 : i32
    %0 = arith.cmpi eq, %arg1, %c0_i32 : i32
    %1 = arith.extui %0 : i1 to i32
    %c0_i32_0 = arith.constant 0 : i32
    %2 = arith.cmpi ne, %1, %c0_i32_0 : i32
    scf.if %2 {
      %c0_59 = arith.constant 0 : index
      %c0_60 = arith.constant 0 : index
      %c0_61 = arith.constant 0 : index
      %132 = vector.load %arg2[%c0_59, %c0_60, %c0_61] : memref<1x16x128xf32, #tpu.memory_space<vmem>>, vector<1x16x128xf32>
      %133 = vector.shape_cast %132 : vector<1x16x128xf32> to vector<16x128xf32>
      %c0_62 = arith.constant 0 : index
      %c0_63 = arith.constant 0 : index
      %c0_64 = arith.constant 0 : index
      %134 = vector.load %arg3[%c0_62, %c0_63, %c0_64] : memref<1x16x128xf32, #tpu.memory_space<vmem>>, vector<1x16x128xf32>
      %135 = vector.shape_cast %134 : vector<1x16x128xf32> to vector<16x128xf32>
      %136 = arith.addf %133, %135 : vector<16x128xf32>
      %137 = arith.truncf %136 : vector<16x128xf32> to vector<16x128xbf16>
      %c0_65 = arith.constant 0 : index
      %c0_66 = arith.constant 0 : index
      %138 = vector.load %arg7[%c0_65, %c0_66] : memref<128x128xbf16, #tpu.memory_space<vmem>>, vector<128x128xbf16>
      %cst_67 = arith.constant dense<0.000000e+00> : vector<16x128xf32>
      %139 = tpu.matmul %137, %138, %cst_67 {dimension_numbers = #tpu.dot_dimension_numbers<[1], [0], [0], [1], [0, 0, 1, 1], [], []>} : vector<16x128xbf16>, vector<128x128xbf16>, vector<16x128xf32> -> vector<16x128xf32>
      %c0_68 = arith.constant 0 : index
      %c0_69 = arith.constant 0 : index
      %140 = vector.load %arg8[%c0_68, %c0_69] : memref<1x128xf32, #tpu.memory_space<vmem>>, vector<1x128xf32>
      %141 = vector.broadcast %140 : vector<1x128xf32> to vector<16x128xf32>
      %142 = arith.addf %139, %141 : vector<16x128xf32>
      %143 = arith.truncf %133 : vector<16x128xf32> to vector<16x128xbf16>
      %c0_70 = arith.constant 0 : index
      %c0_71 = arith.constant 0 : index
      %144 = vector.load %arg9[%c0_70, %c0_71] : memref<128x128xbf16, #tpu.memory_space<vmem>>, vector<128x128xbf16>
      %cst_72 = arith.constant dense<0.000000e+00> : vector<16x128xf32>
      %145 = tpu.matmul %143, %144, %cst_72 {dimension_numbers = #tpu.dot_dimension_numbers<[1], [0], [0], [1], [0, 0, 1, 1], [], []>} : vector<16x128xbf16>, vector<128x128xbf16>, vector<16x128xf32> -> vector<16x128xf32>
      %c0_73 = arith.constant 0 : index
      %c0_74 = arith.constant 0 : index
      %146 = vector.load %arg10[%c0_73, %c0_74] : memref<1x128xf32, #tpu.memory_space<vmem>>, vector<1x128xf32>
      %147 = vector.broadcast %146 : vector<1x128xf32> to vector<16x128xf32>
      %148 = arith.addf %145, %147 : vector<16x128xf32>
      %149 = vector.extract_strided_slice %142 {offsets = [0, 0], sizes = [16, 32], strides = [1, 1]} : vector<16x128xf32> to vector<16x32xf32>
      %150 = arith.truncf %149 : vector<16x32xf32> to vector<16x32xbf16>
      %c0_75 = arith.constant 0 : index
      %c0_76 = arith.constant 0 : index
      %c0_77 = arith.constant 0 : index
      %151 = vector.load %arg22[%c0_75, %c0_76, %c0_77] : memref<4x16x32xbf16, #tpu.memory_space<vmem>>, vector<1x16x32xbf16>
      %152 = vector.shape_cast %151 : vector<1x16x32xbf16> to vector<16x32xbf16>
      %153 = vector.shape_cast %150 : vector<16x32xbf16> to vector<1x16x32xbf16>
      tpu.vector_store %arg22[%c0_75, %c0_76, %c0_77], %153 {strides = array<i32>} : memref<4x16x32xbf16, #tpu.memory_space<vmem>>, vector<1x16x32xbf16>,
      %154 = vector.extract_strided_slice %148 {offsets = [0, 0], sizes = [16, 32], strides = [1, 1]} : vector<16x128xf32> to vector<16x32xf32>
      %155 = arith.truncf %154 : vector<16x32xf32> to vector<16x32xbf16>
      %c0_78 = arith.constant 0 : index
      %c0_79 = arith.constant 0 : index
      %c0_80 = arith.constant 0 : index
      %156 = vector.load %arg23[%c0_78, %c0_79, %c0_80] : memref<4x16x32xbf16, #tpu.memory_space<vmem>>, vector<1x16x32xbf16>
      %157 = vector.shape_cast %156 : vector<1x16x32xbf16> to vector<16x32xbf16>
      %158 = vector.shape_cast %155 : vector<16x32xbf16> to vector<1x16x32xbf16>
      tpu.vector_store %arg23[%c0_78, %c0_79, %c0_80], %158 {strides = array<i32>} : memref<4x16x32xbf16, #tpu.memory_space<vmem>>, vector<1x16x32xbf16>,
      %159 = vector.extract_strided_slice %142 {offsets = [0, 32], sizes = [16, 32], strides = [1, 1]} : vector<16x128xf32> to vector<16x32xf32>
      %160 = arith.truncf %159 : vector<16x32xf32> to vector<16x32xbf16>
      %c1 = arith.constant 1 : index
      %c0_81 = arith.constant 0 : index
      %c0_82 = arith.constant 0 : index
      %161 = vector.load %arg22[%c1, %c0_81, %c0_82] : memref<4x16x32xbf16, #tpu.memory_space<vmem>>, vector<1x16x32xbf16>
      %162 = vector.shape_cast %161 : vector<1x16x32xbf16> to vector<16x32xbf16>
      %163 = vector.shape_cast %160 : vector<16x32xbf16> to vector<1x16x32xbf16>
      tpu.vector_store %arg22[%c1, %c0_81, %c0_82], %163 {strides = array<i32>} : memref<4x16x32xbf16, #tpu.memory_space<vmem>>, vector<1x16x32xbf16>,
      %164 = vector.extract_strided_slice %148 {offsets = [0, 32], sizes = [16, 32], strides = [1, 1]} : vector<16x128xf32> to vector<16x32xf32>
      %165 = arith.truncf %164 : vector<16x32xf32> to vector<16x32xbf16>
      %c1_83 = arith.constant 1 : index
      %c0_84 = arith.constant 0 : index
      %c0_85 = arith.constant 0 : index
      %166 = vector.load %arg23[%c1_83, %c0_84, %c0_85] : memref<4x16x32xbf16, #tpu.memory_space<vmem>>, vector<1x16x32xbf16>
      %167 = vector.shape_cast %166 : vector<1x16x32xbf16> to vector<16x32xbf16>
      %168 = vector.shape_cast %165 : vector<16x32xbf16> to vector<1x16x32xbf16>
      tpu.vector_store %arg23[%c1_83, %c0_84, %c0_85], %168 {strides = array<i32>} : memref<4x16x32xbf16, #tpu.memory_space<vmem>>, vector<1x16x32xbf16>,
      %169 = vector.extract_strided_slice %142 {offsets = [0, 64], sizes = [16, 32], strides = [1, 1]} : vector<16x128xf32> to vector<16x32xf32>
      %170 = arith.truncf %169 : vector<16x32xf32> to vector<16x32xbf16>
      %c2 = arith.constant 2 : index
      %c0_86 = arith.constant 0 : index
      %c0_87 = arith.constant 0 : index
      %171 = vector.load %arg22[%c2, %c0_86, %c0_87] : memref<4x16x32xbf16, #tpu.memory_space<vmem>>, vector<1x16x32xbf16>
      %172 = vector.shape_cast %171 : vector<1x16x32xbf16> to vector<16x32xbf16>
      %173 = vector.shape_cast %170 : vector<16x32xbf16> to vector<1x16x32xbf16>
      tpu.vector_store %arg22[%c2, %c0_86, %c0_87], %173 {strides = array<i32>} : memref<4x16x32xbf16, #tpu.memory_space<vmem>>, vector<1x16x32xbf16>,
      %174 = vector.extract_strided_slice %148 {offsets = [0, 64], sizes = [16, 32], strides = [1, 1]} : vector<16x128xf32> to vector<16x32xf32>
      %175 = arith.truncf %174 : vector<16x32xf32> to vector<16x32xbf16>
      %c2_88 = arith.constant 2 : index
      %c0_89 = arith.constant 0 : index
      %c0_90 = arith.constant 0 : index
      %176 = vector.load %arg23[%c2_88, %c0_89, %c0_90] : memref<4x16x32xbf16, #tpu.memory_space<vmem>>, vector<1x16x32xbf16>
      %177 = vector.shape_cast %176 : vector<1x16x32xbf16> to vector<16x32xbf16>
      %178 = vector.shape_cast %175 : vector<16x32xbf16> to vector<1x16x32xbf16>
      tpu.vector_store %arg23[%c2_88, %c0_89, %c0_90], %178 {strides = array<i32>} : memref<4x16x32xbf16, #tpu.memory_space<vmem>>, vector<1x16x32xbf16>,
      %179 = vector.extract_strided_slice %142 {offsets = [0, 96], sizes = [16, 32], strides = [1, 1]} : vector<16x128xf32> to vector<16x32xf32>
      %180 = arith.truncf %179 : vector<16x32xf32> to vector<16x32xbf16>
      %c3 = arith.constant 3 : index
      %c0_91 = arith.constant 0 : index
      %c0_92 = arith.constant 0 : index
      %181 = vector.load %arg22[%c3, %c0_91, %c0_92] : memref<4x16x32xbf16, #tpu.memory_space<vmem>>, vector<1x16x32xbf16>
      %182 = vector.shape_cast %181 : vector<1x16x32xbf16> to vector<16x32xbf16>
      %183 = vector.shape_cast %180 : vector<16x32xbf16> to vector<1x16x32xbf16>
      tpu.vector_store %arg22[%c3, %c0_91, %c0_92], %183 {strides = array<i32>} : memref<4x16x32xbf16, #tpu.memory_space<vmem>>, vector<1x16x32xbf16>,
      %184 = vector.extract_strided_slice %148 {offsets = [0, 96], sizes = [16, 32], strides = [1, 1]} : vector<16x128xf32> to vector<16x32xf32>
      %185 = arith.truncf %184 : vector<16x32xf32> to vector<16x32xbf16>
      %c3_93 = arith.constant 3 : index
      %c0_94 = arith.constant 0 : index
      %c0_95 = arith.constant 0 : index
      %186 = vector.load %arg23[%c3_93, %c0_94, %c0_95] : memref<4x16x32xbf16, #tpu.memory_space<vmem>>, vector<1x16x32xbf16>
      %187 = vector.shape_cast %186 : vector<1x16x32xbf16> to vector<16x32xbf16>
      %188 = vector.shape_cast %185 : vector<16x32xbf16> to vector<1x16x32xbf16>
      tpu.vector_store %arg23[%c3_93, %c0_94, %c0_95], %188 {strides = array<i32>} : memref<4x16x32xbf16, #tpu.memory_space<vmem>>, vector<1x16x32xbf16>,
    } else {
    }
    %c8_i32 = arith.constant 8 : i32
    %3 = arith.muli %arg1, %c8_i32 : i32
    %4 = tpu.assume_multiple %3, 8 : i32
    %c0 = arith.constant 0 : index
    %5 = arith.index_cast %4 : i32 to index
    %c0_1 = arith.constant 0 : index
    %6 = vector.load %arg2[%c0, %5, %c0_1] : memref<1x16x128xf32, #tpu.memory_space<vmem>>, vector<1x8x128xf32>
    %7 = vector.shape_cast %6 : vector<1x8x128xf32> to vector<8x128xf32>
    %c0_2 = arith.constant 0 : index
    %8 = arith.index_cast %4 : i32 to index
    %c0_3 = arith.constant 0 : index
    %9 = vector.load %arg3[%c0_2, %8, %c0_3] : memref<1x16x128xf32, #tpu.memory_space<vmem>>, vector<1x8x128xf32>
    %10 = vector.shape_cast %9 : vector<1x8x128xf32> to vector<8x128xf32>
    %11 = arith.addf %7, %10 : vector<8x128xf32>
    %12 = arith.truncf %11 : vector<8x128xf32> to vector<8x128xbf16>
    %c0_4 = arith.constant 0 : index
    %c0_5 = arith.constant 0 : index
    %13 = vector.load %arg5[%c0_4, %c0_5] : memref<128x128xbf16, #tpu.memory_space<vmem>>, vector<128x128xbf16>
    %cst = arith.constant dense<0.000000e+00> : vector<8x128xf32>
    %14 = tpu.matmul %12, %13, %cst {dimension_numbers = #tpu.dot_dimension_numbers<[1], [0], [0], [1], [0, 0, 1, 1], [], []>} : vector<8x128xbf16>, vector<128x128xbf16>, vector<8x128xf32> -> vector<8x128xf32>
    %c0_6 = arith.constant 0 : index
    %c0_7 = arith.constant 0 : index
    %15 = vector.load %arg6[%c0_6, %c0_7] : memref<1x128xf32, #tpu.memory_space<vmem>>, vector<1x128xf32>
    %16 = vector.broadcast %15 : vector<1x128xf32> to vector<8x128xf32>
    %17 = arith.addf %14, %16 : vector<8x128xf32>
    %cst_8 = arith.constant 0.176776692 : f32
    %18 = vector.broadcast %cst_8 : f32 to vector<8x128xf32>
    %19 = arith.mulf %17, %18 : vector<8x128xf32>
    %20 = vector.extract_strided_slice %19 {offsets = [0, 0], sizes = [8, 32], strides = [1, 1]} : vector<8x128xf32> to vector<8x32xf32>
    %21 = vector.shape_cast %20 : vector<8x32xf32> to vector<1x8x32xf32>
    %22 = vector.extract_strided_slice %19 {offsets = [0, 32], sizes = [8, 32], strides = [1, 1]} : vector<8x128xf32> to vector<8x32xf32>
    %23 = vector.shape_cast %22 : vector<8x32xf32> to vector<1x8x32xf32>
    %24 = vector.extract_strided_slice %19 {offsets = [0, 64], sizes = [8, 32], strides = [1, 1]} : vector<8x128xf32> to vector<8x32xf32>
    %25 = vector.shape_cast %24 : vector<8x32xf32> to vector<1x8x32xf32>
    %26 = vector.extract_strided_slice %19 {offsets = [0, 96], sizes = [8, 32], strides = [1, 1]} : vector<8x128xf32> to vector<8x32xf32>
    %27 = vector.shape_cast %26 : vector<8x32xf32> to vector<1x8x32xf32>
    %28 = tpu.concatenate %21, %23, %25, %27 in 0 : vector<1x8x32xf32>, vector<1x8x32xf32>, vector<1x8x32xf32>, vector<1x8x32xf32> -> vector<4x8x32xf32>
    %29 = arith.truncf %28 : vector<4x8x32xf32> to vector<4x8x32xbf16>
    %c0_9 = arith.constant 0 : index
    %c0_10 = arith.constant 0 : index
    %c0_11 = arith.constant 0 : index
    %30 = vector.load %arg22[%c0_9, %c0_10, %c0_11] : memref<4x16x32xbf16, #tpu.memory_space<vmem>>, vector<4x16x32xbf16>
    "tpu.trace_start"() <{level = 10 : i32, message = "hqd,hkd->hqk"}> : () -> ()
    %cst_12 = arith.constant dense<0.000000e+00> : vector<4x8x16xf32>
    %31 = tpu.matmul %29, %30, %cst_12 {dimension_numbers = #tpu.dot_dimension_numbers<[2], [2], [1], [1], [0, 0, 0, 1, 1, 1], [0], [0]>} : vector<4x8x32xbf16>, vector<4x16x32xbf16>, vector<4x8x16xf32> -> vector<4x8x16xf32>
    "tpu.trace_stop"() : () -> ()
    %c0_13 = arith.constant 0 : index
    %c0_14 = arith.constant 0 : index
    %c0_15 = arith.constant 0 : index
    %32 = vector.load %arg4[%c0_13, %c0_14, %c0_15] : memref<1x1x16xf32, #tpu.memory_space<vmem>>, vector<1x1x16xf32>
    %33 = vector.shape_cast %32 : vector<1x1x16xf32> to vector<1x16xf32>
    %34 = vector.shape_cast %33 : vector<1x16xf32> to vector<1x1x16xf32>
    %35 = vector.broadcast %34 : vector<1x1x16xf32> to vector<4x8x16xf32>
    %36 = arith.addf %31, %35 : vector<4x8x16xf32>
    %cst_16 = arith.constant dense<0xFF800000> : vector<4x8xf32>
    %37 = vector.multi_reduction <maximumf>, %36, %cst_16 [2] : vector<4x8x16xf32> to vector<4x8xf32>
    %38 = vector.shape_cast %37 : vector<4x8xf32> to vector<4x8x1xf32>
    %39 = vector.broadcast %38 : vector<4x8x1xf32> to vector<4x8x16xf32>
    %40 = arith.subf %36, %39 : vector<4x8x16xf32>
    %41 = math.exp %40 : vector<4x8x16xf32>
    %cst_17 = arith.constant dense<0.000000e+00> : vector<4x8xf32>
    %42 = vector.multi_reduction <add>, %41, %cst_17 [2] : vector<4x8x16xf32> to vector<4x8xf32>
    %43 = vector.shape_cast %42 : vector<4x8xf32> to vector<4x8x1xf32>
    %44 = tpu.reciprocal %43 {approx = true} : vector<4x8x1xf32> -> vector<4x8x1xf32>
    %45 = vector.broadcast %44 : vector<4x8x1xf32> to vector<4x8x16xf32>
    %46 = arith.mulf %41, %45 : vector<4x8x16xf32>
    %47 = arith.truncf %46 : vector<4x8x16xf32> to vector<4x8x16xbf16>
    %c0_18 = arith.constant 0 : index
    %c0_19 = arith.constant 0 : index
    %c0_20 = arith.constant 0 : index
    %48 = vector.load %arg23[%c0_18, %c0_19, %c0_20] : memref<4x16x32xbf16, #tpu.memory_space<vmem>>, vector<4x16x32xbf16>
    "tpu.trace_start"() <{level = 10 : i32, message = "hqk,hkd->hqd"}> : () -> ()
    %cst_21 = arith.constant dense<0.000000e+00> : vector<4x8x32xf32>
    %49 = tpu.matmul %47, %48, %cst_21 {dimension_numbers = #tpu.dot_dimension_numbers<[2], [1], [1], [2], [0, 0, 0, 1, 1, 2], [0], [0]>} : vector<4x8x16xbf16>, vector<4x16x32xbf16>, vector<4x8x32xf32> -> vector<4x8x32xf32>
    "tpu.trace_stop"() : () -> ()
    %50 = vector.extract_strided_slice %49 {offsets = [0, 0, 0], sizes = [1, 8, 32], strides = [1, 1, 1]} : vector<4x8x32xf32> to vector<1x8x32xf32>
    %51 = vector.shape_cast %50 : vector<1x8x32xf32> to vector<8x32xf32>
    %52 = vector.extract_strided_slice %49 {offsets = [1, 0, 0], sizes = [1, 8, 32], strides = [1, 1, 1]} : vector<4x8x32xf32> to vector<1x8x32xf32>
    %53 = vector.shape_cast %52 : vector<1x8x32xf32> to vector<8x32xf32>
    %54 = vector.extract_strided_slice %49 {offsets = [2, 0, 0], sizes = [1, 8, 32], strides = [1, 1, 1]} : vector<4x8x32xf32> to vector<1x8x32xf32>
    %55 = vector.shape_cast %54 : vector<1x8x32xf32> to vector<8x32xf32>
    %56 = vector.extract_strided_slice %49 {offsets = [3, 0, 0], sizes = [1, 8, 32], strides = [1, 1, 1]} : vector<4x8x32xf32> to vector<1x8x32xf32>
    %57 = vector.shape_cast %56 : vector<1x8x32xf32> to vector<8x32xf32>
    %58 = tpu.concatenate %51, %53, %55, %57 in 1 : vector<8x32xf32>, vector<8x32xf32>, vector<8x32xf32>, vector<8x32xf32> -> vector<8x128xf32>
    %59 = arith.truncf %58 : vector<8x128xf32> to vector<8x128xbf16>
    %c0_22 = arith.constant 0 : index
    %c0_23 = arith.constant 0 : index
    %60 = vector.load %arg11[%c0_22, %c0_23] : memref<128x128xbf16, #tpu.memory_space<vmem>>, vector<128x128xbf16>
    %cst_24 = arith.constant dense<0.000000e+00> : vector<8x128xf32>
    %61 = tpu.matmul %59, %60, %cst_24 {dimension_numbers = #tpu.dot_dimension_numbers<[1], [0], [0], [1], [0, 0, 1, 1], [], []>} : vector<8x128xbf16>, vector<128x128xbf16>, vector<8x128xf32> -> vector<8x128xf32>
    %c0_25 = arith.constant 0 : index
    %c0_26 = arith.constant 0 : index
    %62 = vector.load %arg12[%c0_25, %c0_26] : memref<1x128xf32, #tpu.memory_space<vmem>>, vector<1x128xf32>
    %63 = vector.broadcast %62 : vector<1x128xf32> to vector<8x128xf32>
    %64 = arith.addf %61, %63 : vector<8x128xf32>
    %65 = arith.addf %7, %64 : vector<8x128xf32>
    %c0_27 = arith.constant 0 : index
    %c0_28 = arith.constant 0 : index
    %66 = vector.load %arg13[%c0_27, %c0_28] : memref<1x128xf32, #tpu.memory_space<vmem>>, vector<1x128xf32>
    %c0_29 = arith.constant 0 : index
    %c0_30 = arith.constant 0 : index
    %67 = vector.load %arg14[%c0_29, %c0_30] : memref<1x128xf32, #tpu.memory_space<vmem>>, vector<1x128xf32>
    %cst_31 = arith.constant dense<0.000000e+00> : vector<8xf32>
    %68 = vector.multi_reduction <add>, %65, %cst_31 [1] : vector<8x128xf32> to vector<8xf32>
    %69 = vector.shape_cast %68 : vector<8xf32> to vector<8x1xf32>
    %cst_32 = arith.constant 1.280000e+02 : f32
    %70 = vector.broadcast %cst_32 : f32 to vector<8x1xf32>
    %71 = arith.divf %69, %70 : vector<8x1xf32>
    %72 = vector.broadcast %71 : vector<8x1xf32> to vector<8x128xf32>
    %73 = arith.subf %65, %72 : vector<8x128xf32>
    %74 = arith.mulf %73, %73 : vector<8x128xf32>
    %cst_33 = arith.constant dense<0.000000e+00> : vector<8xf32>
    %75 = vector.multi_reduction <add>, %74, %cst_33 [1] : vector<8x128xf32> to vector<8xf32>
    %76 = vector.shape_cast %75 : vector<8xf32> to vector<8x1xf32>
    %cst_34 = arith.constant 1.280000e+02 : f32
    %77 = vector.broadcast %cst_34 : f32 to vector<8x1xf32>
    %78 = arith.divf %76, %77 : vector<8x1xf32>
    %79 = vector.broadcast %71 : vector<8x1xf32> to vector<8x128xf32>
    %80 = arith.subf %65, %79 : vector<8x128xf32>
    %cst_35 = arith.constant 9.99999974E-6 : f32
    %81 = vector.broadcast %cst_35 : f32 to vector<8x1xf32>
    %82 = arith.addf %78, %81 : vector<8x1xf32>
    %83 = math.rsqrt %82 : vector<8x1xf32>
    %84 = vector.broadcast %83 : vector<8x1xf32> to vector<8x128xf32>
    %85 = arith.mulf %80, %84 : vector<8x128xf32>
    %86 = vector.broadcast %66 : vector<1x128xf32> to vector<8x128xf32>
    %87 = arith.mulf %85, %86 : vector<8x128xf32>
    %88 = vector.broadcast %67 : vector<1x128xf32> to vector<8x128xf32>
    %89 = arith.addf %87, %88 : vector<8x128xf32>
    %90 = arith.truncf %89 : vector<8x128xf32> to vector<8x128xbf16>
    %c0_36 = arith.constant 0 : index
    %c0_37 = arith.constant 0 : index
    %91 = vector.load %arg15[%c0_36, %c0_37] : memref<128x256xbf16, #tpu.memory_space<vmem>>, vector<128x256xbf16>
    %cst_38 = arith.constant dense<0.000000e+00> : vector<8x256xf32>
    %92 = tpu.matmul %90, %91, %cst_38 {dimension_numbers = #tpu.dot_dimension_numbers<[1], [0], [0], [1], [0, 0, 1, 1], [], []>} : vector<8x128xbf16>, vector<128x256xbf16>, vector<8x256xf32> -> vector<8x256xf32>
    %c0_39 = arith.constant 0 : index
    %c0_40 = arith.constant 0 : index
    %93 = vector.load %arg16[%c0_39, %c0_40] : memref<1x256xf32, #tpu.memory_space<vmem>>, vector<1x256xf32>
    %94 = vector.broadcast %93 : vector<1x256xf32> to vector<8x256xf32>
    %95 = arith.addf %92, %94 : vector<8x256xf32>
    %cst_41 = arith.constant 0.000000e+00 : f32
    %96 = vector.broadcast %cst_41 : f32 to vector<8x256xf32>
    %97 = arith.maximumf %95, %96 : vector<8x256xf32>
    %98 = arith.truncf %97 : vector<8x256xf32> to vector<8x256xbf16>
    %c0_42 = arith.constant 0 : index
    %c0_43 = arith.constant 0 : index
    %99 = vector.load %arg17[%c0_42, %c0_43] : memref<256x128xbf16, #tpu.memory_space<vmem>>, vector<256x128xbf16>
    %cst_44 = arith.constant dense<0.000000e+00> : vector<8x128xf32>
    %100 = tpu.matmul %98, %99, %cst_44 {dimension_numbers = #tpu.dot_dimension_numbers<[1], [0], [0], [1], [0, 0, 1, 1], [], []>} : vector<8x256xbf16>, vector<256x128xbf16>, vector<8x128xf32> -> vector<8x128xf32>
    %c0_45 = arith.constant 0 : index
    %c0_46 = arith.constant 0 : index
    %101 = vector.load %arg18[%c0_45, %c0_46] : memref<1x128xf32, #tpu.memory_space<vmem>>, vector<1x128xf32>
    %102 = vector.broadcast %101 : vector<1x128xf32> to vector<8x128xf32>
    %103 = arith.addf %100, %102 : vector<8x128xf32>
    %104 = arith.addf %89, %103 : vector<8x128xf32>
    %c0_47 = arith.constant 0 : index
    %c0_48 = arith.constant 0 : index
    %105 = vector.load %arg19[%c0_47, %c0_48] : memref<1x128xf32, #tpu.memory_space<vmem>>, vector<1x128xf32>
    %c0_49 = arith.constant 0 : index
    %c0_50 = arith.constant 0 : index
    %106 = vector.load %arg20[%c0_49, %c0_50] : memref<1x128xf32, #tpu.memory_space<vmem>>, vector<1x128xf32>
    %cst_51 = arith.constant dense<0.000000e+00> : vector<8xf32>
    %107 = vector.multi_reduction <add>, %104, %cst_51 [1] : vector<8x128xf32> to vector<8xf32>
    %108 = vector.shape_cast %107 : vector<8xf32> to vector<8x1xf32>
    %cst_52 = arith.constant 1.280000e+02 : f32
    %109 = vector.broadcast %cst_52 : f32 to vector<8x1xf32>
    %110 = arith.divf %108, %109 : vector<8x1xf32>
    %111 = vector.broadcast %110 : vector<8x1xf32> to vector<8x128xf32>
    %112 = arith.subf %104, %111 : vector<8x128xf32>
    %113 = arith.mulf %112, %112 : vector<8x128xf32>
    %cst_53 = arith.constant dense<0.000000e+00> : vector<8xf32>
    %114 = vector.multi_reduction <add>, %113, %cst_53 [1] : vector<8x128xf32> to vector<8xf32>
    %115 = vector.shape_cast %114 : vector<8xf32> to vector<8x1xf32>
    %cst_54 = arith.constant 1.280000e+02 : f32
    %116 = vector.broadcast %cst_54 : f32 to vector<8x1xf32>
    %117 = arith.divf %115, %116 : vector<8x1xf32>
    %118 = vector.broadcast %110 : vector<8x1xf32> to vector<8x128xf32>
    %119 = arith.subf %104, %118 : vector<8x128xf32>
    %cst_55 = arith.constant 9.99999974E-6 : f32
    %120 = vector.broadcast %cst_55 : f32 to vector<8x1xf32>
    %121 = arith.addf %117, %120 : vector<8x1xf32>
    %122 = math.rsqrt %121 : vector<8x1xf32>
    %123 = vector.broadcast %122 : vector<8x1xf32> to vector<8x128xf32>
    %124 = arith.mulf %119, %123 : vector<8x128xf32>
    %125 = vector.broadcast %105 : vector<1x128xf32> to vector<8x128xf32>
    %126 = arith.mulf %124, %125 : vector<8x128xf32>
    %127 = vector.broadcast %106 : vector<1x128xf32> to vector<8x128xf32>
    %128 = arith.addf %126, %127 : vector<8x128xf32>
    %c0_56 = arith.constant 0 : index
    %c0_57 = arith.constant 0 : index
    %c0_58 = arith.constant 0 : index
    %129 = vector.load %arg21[%c0_56, %c0_57, %c0_58] : memref<1x8x128xf32, #tpu.memory_space<vmem>>, vector<1x8x128xf32>
    %130 = vector.shape_cast %129 : vector<1x8x128xf32> to vector<8x128xf32>
    %131 = vector.shape_cast %128 : vector<8x128xf32> to vector<1x8x128xf32>
    tpu.vector_store %arg21[%c0_56, %c0_57, %c0_58], %131 {strides = array<i32>} : memref<1x8x128xf32, #tpu.memory_space<vmem>>, vector<1x8x128xf32>,
    return
  }
  func.func @transform_0(%arg0: i32, %arg1: i32) -> (i32, i32, i32) {
    %c0_i32 = arith.constant 0 : i32
    %c0_i32_0 = arith.constant 0 : i32
    %c0_i32_1 = arith.constant 0 : i32
    return %arg0, %c0_i32, %c0_i32_0 : i32, i32, i32
  }
  func.func @transform_1(%arg0: i32, %arg1: i32) -> (i32, i32, i32) {
    %c0_i32 = arith.constant 0 : i32
    %c0_i32_0 = arith.constant 0 : i32
    %c0_i32_1 = arith.constant 0 : i32
    return %arg0, %c0_i32, %c0_i32_0 : i32, i32, i32
  }
  func.func @transform_2(%arg0: i32, %arg1: i32) -> (i32, i32, i32) {
    %c0_i32 = arith.constant 0 : i32
    %c0_i32_0 = arith.constant 0 : i32
    %c0_i32_1 = arith.constant 0 : i32
    return %arg0, %c0_i32, %c0_i32_0 : i32, i32, i32
  }
  func.func @transform_3(%arg0: i32, %arg1: i32) -> (i32, i32) {
    %c0_i32 = arith.constant 0 : i32
    %c0_i32_0 = arith.constant 0 : i32
    %c0_i32_1 = arith.constant 0 : i32
    return %c0_i32, %c0_i32_0 : i32, i32
  }
  func.func @transform_4(%arg0: i32, %arg1: i32) -> (i32, i32) {
    %c0_i32 = arith.constant 0 : i32
    %c0_i32_0 = arith.constant 0 : i32
    %c0_i32_1 = arith.constant 0 : i32
    return %c0_i32, %c0_i32_0 : i32, i32
  }
  func.func @transform_5(%arg0: i32, %arg1: i32) -> (i32, i32) {
    %c0_i32 = arith.constant 0 : i32
    %c0_i32_0 = arith.constant 0 : i32
    %c0_i32_1 = arith.constant 0 : i32
    return %c0_i32, %c0_i32_0 : i32, i32
  }
  func.func @transform_6(%arg0: i32, %arg1: i32) -> (i32, i32) {
    %c0_i32 = arith.constant 0 : i32
    %c0_i32_0 = arith.constant 0 : i32
    %c0_i32_1 = arith.constant 0 : i32
    return %c0_i32, %c0_i32_0 : i32, i32
  }
  func.func @transform_7(%arg0: i32, %arg1: i32) -> (i32, i32) {
    %c0_i32 = arith.constant 0 : i32
    %c0_i32_0 = arith.constant 0 : i32
    %c0_i32_1 = arith.constant 0 : i32
    return %c0_i32, %c0_i32_0 : i32, i32
  }
  func.func @transform_8(%arg0: i32, %arg1: i32) -> (i32, i32) {
    %c0_i32 = arith.constant 0 : i32
    %c0_i32_0 = arith.constant 0 : i32
    %c0_i32_1 = arith.constant 0 : i32
    return %c0_i32, %c0_i32_0 : i32, i32
  }
  func.func @transform_9(%arg0: i32, %arg1: i32) -> (i32, i32) {
    %c0_i32 = arith.constant 0 : i32
    %c0_i32_0 = arith.constant 0 : i32
    %c0_i32_1 = arith.constant 0 : i32
    return %c0_i32, %c0_i32_0 : i32, i32
  }
  func.func @transform_10(%arg0: i32, %arg1: i32) -> (i32, i32) {
    %c0_i32 = arith.constant 0 : i32
    %c0_i32_0 = arith.constant 0 : i32
    %c0_i32_1 = arith.constant 0 : i32
    return %c0_i32, %c0_i32_0 : i32, i32
  }
  func.func @transform_11(%arg0: i32, %arg1: i32) -> (i32, i32) {
    %c0_i32 = arith.constant 0 : i32
    %c0_i32_0 = arith.constant 0 : i32
    %c0_i32_1 = arith.constant 0 : i32
    return %c0_i32, %c0_i32_0 : i32, i32
  }
  func.func @transform_12(%arg0: i32, %arg1: i32) -> (i32, i32) {
    %c0_i32 = arith.constant 0 : i32
    %c0_i32_0 = arith.constant 0 : i32
    %c0_i32_1 = arith.constant 0 : i32
    return %c0_i32, %c0_i32_0 : i32, i32
  }
  func.func @transform_13(%arg0: i32, %arg1: i32) -> (i32, i32) {
    %c0_i32 = arith.constant 0 : i32
    %c0_i32_0 = arith.constant 0 : i32
    %c0_i32_1 = arith.constant 0 : i32
    return %c0_i32, %c0_i32_0 : i32, i32
  }
  func.func @transform_14(%arg0: i32, %arg1: i32) -> (i32, i32) {
    %c0_i32 = arith.constant 0 : i32
    %c0_i32_0 = arith.constant 0 : i32
    %c0_i32_1 = arith.constant 0 : i32
    return %c0_i32, %c0_i32_0 : i32, i32
  }
  func.func @transform_15(%arg0: i32, %arg1: i32) -> (i32, i32) {
    %c0_i32 = arith.constant 0 : i32
    %c0_i32_0 = arith.constant 0 : i32
    %c0_i32_1 = arith.constant 0 : i32
    return %c0_i32, %c0_i32_0 : i32, i32
  }
  func.func @transform_16(%arg0: i32, %arg1: i32) -> (i32, i32) {
    %c0_i32 = arith.constant 0 : i32
    %c0_i32_0 = arith.constant 0 : i32
    %c0_i32_1 = arith.constant 0 : i32
    return %c0_i32, %c0_i32_0 : i32, i32
  }
  func.func @transform_17(%arg0: i32, %arg1: i32) -> (i32, i32) {
    %c0_i32 = arith.constant 0 : i32
    %c0_i32_0 = arith.constant 0 : i32
    %c0_i32_1 = arith.constant 0 : i32
    return %c0_i32, %c0_i32_0 : i32, i32
  }
  func.func @transform_18(%arg0: i32, %arg1: i32) -> (i32, i32) {
    %c0_i32 = arith.constant 0 : i32
    %c0_i32_0 = arith.constant 0 : i32
    %c0_i32_1 = arith.constant 0 : i32
    return %c0_i32, %c0_i32_0 : i32, i32
  }
  func.func @transform_19(%arg0: i32, %arg1: i32) -> (i32, i32, i32) {
    %c0_i32 = arith.constant 0 : i32
    %c0_i32_0 = arith.constant 0 : i32
    return %arg0, %arg1, %c0_i32 : i32, i32, i32
  }
}

</mosaic_0001>

<bundles_post_ra>
// kernel: tpu_custom_call.1
= control target key start
LH: loop header
LB: loop body
LE: loop exit
PB: predicated region body
PF: predicated region fallthrough
CT: control target
= control target key end

     0   :  { %s4018_s0 = inlined_call_operand.hbm [shape: f32[2,16,128], index: 0, kind: input, shape index: {}]   ;;  %s4019_s1 = inlined_call_operand.hbm [shape: f32[2,16,128], index: 1, kind: input, shape index: {}]   ;;  %s4020_s2 = inlined_call_operand.vmem [shape: f32[2,1,16], index: 2, kind: input, shape index: {}]   ;;  %s4021_s3 = inlined_call_operand.hbm [shape: bf16[128,128], index: 3, kind: input, shape index: {}]   ;;  %s4022_s4 = inlined_call_operand.vmem [shape: f32[1,128], index: 4, kind: input, shape index: {}]   ;;  %s4023_s5 = inlined_call_operand.hbm [shape: bf16[128,128], index: 5, kind: input, shape index: {}]   ;;  %s4024_s6 = inlined_call_operand.vmem [shape: f32[1,128], index: 6, kind: input, shape index: {}]   ;;  %s4025_s7 = inlined_call_operand.hbm [shape: bf16[128,128], index: 7, kind: input, shape index: {}]   ;;  %s4026_s8 = inlined_call_operand.vmem [shape: f32[1,128], index: 8, kind: input, shape index: {}]   ;;  %s4027_s9 = inlined_call_operand.hbm [shape: bf16[128,128], index: 9, kind: input, shape index: {}]   ;;  %s4028_s10 = inlined_call_operand.vmem [shape: f32[1,128], index: 10, kind: input, shape index: {}]   ;;  %s4029_s11 = inlined_call_operand.vmem [shape: f32[1,128], index: 11, kind: input, shape index: {}]   ;;  %s4030_s12 = inlined_call_operand.vmem [shape: f32[1,128], index: 12, kind: input, shape index: {}]   ;;  %s4031_s13 = inlined_call_operand.hbm [shape: bf16[128,256], index: 13, kind: input, shape index: {}]   ;;  %s4032_s14 = inlined_call_operand.vmem [shape: f32[1,256], index: 14, kind: input, shape index: {}]   ;;  %s4033_s15 = inlined_call_operand.hbm [shape: bf16[256,128], index: 15, kind: input, shape index: {}]   ;;  %s4034_s16 = inlined_call_operand.vmem [shape: f32[1,128], index: 16, kind: input, shape index: {}]   ;;  %s4035_s17 = inlined_call_operand.vmem [shape: f32[1,128], index: 17, kind: input, shape index: {}]   ;;  %s4036_s18 = inlined_call_operand.vmem [shape: f32[1,128], index: 18, kind: input, shape index: {}]   ;;  %s4037_s19 = inlined_call_operand.hbm [shape: f32[2,16,128], index: 19, kind: output, shape index: {}]  }
   0x1   :  { %4059 = sst [smem:[#allocation33_spill]] %s4018_s0 }
   0x2   :  { %4060 = sst [smem:[#allocation34_spill]] %s4019_s1 }
   0x3   :  { %4061 = sst [smem:[#allocation35_spill]] %s4020_s2 }
   0x4   :  { %4062 = sst [smem:[#allocation36_spill]] %s4021_s3 }
   0x5   :  { %4063 = sst [smem:[#allocation37_spill]] %s4022_s4 }
   0x6   :  { %4064 = sst [smem:[#allocation38_spill]] %s4023_s5 }
   0x7   :  { %4065 = sst [smem:[#allocation39_spill]] %s4024_s6 }
   0x8   :  { %4066 = sst [smem:[#allocation40_spill]] %s4025_s7 }
   0x9   :  { %4067 = sst [smem:[#allocation41_spill]] %s4026_s8 }
   0xa   :  { %4068 = sst [smem:[#allocation42_spill]] %s4027_s9 }
   0xb   :  { %4069 = sst [smem:[#allocation43_spill]] %s4028_s10 }
   0xc   :  { %4070 = sst [smem:[#allocation44_spill]] %s4029_s11 }
   0xd   :  { %4071 = sst [smem:[#allocation45_spill]] %s4030_s12 }
   0xe   :  { %4072 = sst [smem:[#allocation46_spill]] %s4031_s13 }
   0xf   :  { %4073 = sst [smem:[#allocation47_spill]] %s4032_s14 }
  0x10   :  { %4074 = sst [smem:[#allocation48_spill]] %s4033_s15 }
  0x11   :  { %4075 = sst [smem:[#allocation49_spill]] %s4034_s16 }
  0x12   :  { %4076 = sst [smem:[#allocation50_spill]] %s4035_s17 }
  0x13   :  { %4077 = sst [smem:[#allocation51_spill]] %s4036_s18 }
  0x14   :  { %4078 = sst [smem:[#allocation52_spill]] %s4037_s19 }
  0x15   :  { %24 = vsyncpa [#allocation5], 0 }
  0x16   :  { %26 = vsyncpa [#allocation5 + $0x1], 0 }
  0x17   :  { %27 = vsyncpa [#allocation8], 0 }
  0x18   :  { %29 = vsyncpa [#allocation8 + $0x1], 0 }
  0x19   :  { %30 = vsyncpa [#allocation11], 0 }
  0x1a   :  { %31 = vsyncpa [#allocation14], 0 }
  0x1b   :  { %32 = vsyncpa [#allocation17], 0 }
  0x1c   :  { %33 = vsyncpa [#allocation6], 0 }
  0x1d   :  { %35 = vsyncpa [#allocation6 + $0x1], 0  ;;  %s3402_s0 = smov 0   ;;  %s3404_s30 = smov 0  }
  0x1e   :  { %s3406_s20 = smov 0   ;;  %s3408_s21 = smov 0  }
  0x1f   :  { %s3410_s1 = smov 0   ;;  %s3412_s22 = smov 0  }
  0x20   :  { %s3414_s2 = smov 0   ;;  %s3416_s23 = smov 0  }
  0x21   :  { %4079 = sst [smem:[#allocation26_spill]] %s3414_s2  ;;  %s3418_s24 = smov 0  }
  0x22   :  { %s3420_s25 = smov 0   ;;  %s3422_s3 = smov 0  }
  0x23 LB: > { %s4081_s2 = sld [smem:[#allocation26_spill]]  ;;  %4084 = sst [smem:[#allocation28_spill]] %s3264_s23  ;;  %s3276_s3 = sphi %s3422_s3, %s41_s3   ;;  %s3272_s25 = sphi %s3420_s25, %s4145_s25   ;;  %s3268_s24 = sphi %s3418_s24, %s4153_s24   ;;  %s3264_s23 = sphi %s3416_s23, %s4143_s23   ;;  %s3256_s22 = sphi %s3412_s22, %s4151_s22   ;;  %s3252_s1 = sphi %s3410_s1, %s4150_s1   ;;  %s3248_s21 = sphi %s3408_s21, %s4149_s21   ;;  %s3244_s20 = sphi %s3406_s20, %s4148_s20   ;;  %s3240_s30 = sphi %s3404_s30, %s4147_s30   ;;  %s3236_s0 = sphi %s3402_s0, %s4146_s0  }
  0x24   : > { %4082 = sst [smem:[#allocation26_spill]] %s3236_s0  ;;  %s3458_s26 = sadd.s32 4294967295, %s3276_s3  }
  0x25   : > { %4085 = sst [smem:[#allocation29_spill]] %s3272_s25  ;;  %p2314_p0 = scmp.ge.s32.totalorder %s3276_s3, 1 }
  0x26   : > { %p4045_p1 = scmp.eq.s32.totalorder %s3458_s26, 0  ;;  %p500_p3 = scmp.lt.s32.totalorder %s3276_s3, 5 }
  0x27   : > { %s3278_s28 = smov [#allocation9]   ;;  %s3279_s18 = smov [#allocation10]  }
  0x28   : > { %p3464_p4 = pnand %p2314_p0, %p500_p3  ;;  %s512_s29 = sshll.u32 %s3278_s28, 4  ;;  %s3468_s29 = int_to_ptr.vmem [resolvable:$true] %s512_s29 }
  0x29   : > { %4083 = sst [smem:[#allocation27_spill]] %s4081_s2  ;;  %s528_s17 = sshll.u32 %s3279_s18, 4  ;;  %s3478_s17 = int_to_ptr.vmem [resolvable:$true] %s528_s17 }
  0x2a   : > { %s4086_s27 = scalar_select %p3464_p4, 1, 0 }
  0x2b   : > { %p2661_p5 = pneg %p3464_p4  ;;  %s3280_s16 = smov [#allocation13]  }
  0x2c   : > { %4087 = sst [smem:[#allocation30_spill]] %s4086_s27  ;;  %s560_s14 = sshll.u32 %s3280_s16, 4  ;;  %s3480_s14 = int_to_ptr.vmem [resolvable:$true] %s560_s14 }
  0x2d   : > { %p3474_p6 = pnand %p2661_p5, %p4045_p1  ;;  %s4089_s11 = sld [smem:[#allocation36_spill]] }
  0x2f   : > { %p3490_p8 = pneg %p3474_p6 }
  0x33   : > { %s2906_s10 = scalar_lea.hbm %s4089_s11, 1024 }
  0x34   : > { %p2907_p7 = scmp.ne.s32.totalorder %s4089_s11, %s2906_s10  ;;  %p2913_p11 = scmp.lt.u32.totalorder %s2906_s10, %s4089_s11 }
  0x36   : > { %p2909_p9 = pnand %p3490_p8, %p2907_p7 }
  0x38   : > { %p2910_p10 = pneg %p2909_p9 }
  0x3a   : > { %p2915_p12 = pnand %p2913_p11, %p2910_p10 }
  0x3c   : > { %2918 = shalt.err (!%p2915_p12)
}
  0x3d   : > { %s2919_s4 = scalar_lea.vmem %s3468_s29, 1024  ;;  %p2927_p5 = scmp.lt.s32.totalorder %s3468_s29, %s3468_s29 }
  0x3e   : > { %p2920_p13 = scmp.ne.s32.totalorder %s3468_s29, %s2919_s4  ;;  %p2928_p2 = scmp.lt.s32.totalorder %s2919_s4, %s2919_s4 }
  0x40   : > { %p2922_p0 = pnand %p2920_p13, %p3490_p8  ;;  %p2929_p7 = por %p2928_p2, %p2927_p5 }
  0x42   : > { %p2923_p3 = pneg %p2922_p0 }
  0x44   : > { %p2930_p9 = pnand %p2929_p7, %p2923_p3 }
  0x46   : > { %2933 = shalt.err (!%p2930_p9)
}
  0x47   : > { %s4047_s6 = smov 64   ;;  %s4048_s10 = smov 4  }
  0x48   : > { %2664 = dma.hbm_to_vmem [thread:$0]  (!%p3474_p6), %s4089_s11, 1024, %s3468_s29, [#allocation8], %s4047_s6, %s4047_s6, %s4048_s10  }
  0x49   : > { %s4091_s5 = sld [smem:[#allocation38_spill]] }
  0x4f   : > { %s2934_s4 = scalar_lea.hbm %s4091_s5, 1024 }
  0x50   : > { %p2935_p2 = scmp.ne.s32.totalorder %s4091_s5, %s2934_s4  ;;  %p2941_p12 = scmp.lt.u32.totalorder %s2934_s4, %s4091_s5 }
  0x52   : > { %p2937_p10 = pnand %p2935_p2, %p3490_p8 }
  0x54   : > { %p2938_p11 = pneg %p2937_p10 }
  0x56   : > { %p2943_p13 = pnand %p2941_p12, %p2938_p11 }
  0x58   : > { %2946 = shalt.err (!%p2943_p13)
}
  0x59   : > { %s2947_s29 = scalar_lea.vmem %s3478_s17, 1024  ;;  %p2955_p7 = scmp.lt.s32.totalorder %s3478_s17, %s3478_s17 }
  0x5a   : > { %p2948_p0 = scmp.ne.s32.totalorder %s3478_s17, %s2947_s29  ;;  %p2956_p9 = scmp.lt.s32.totalorder %s2947_s29, %s2947_s29 }
  0x5c   : > { %p2950_p3 = pnand %p2948_p0, %p3490_p8  ;;  %p2957_p2 = por %p2956_p9, %p2955_p7 }
  0x5e   : > { %p2951_p5 = pneg %p2950_p3 }
  0x60   : > { %p2958_p10 = pnand %p2957_p2, %p2951_p5 }
  0x62   : > { %2961 = shalt.err (!%p2958_p10)
}
  0x63   : > { %2667 = dma.hbm_to_vmem [thread:$0]  (!%p3474_p6), %s4091_s5, 1024, %s3478_s17, [#allocation11], %s4047_s6, %s4047_s6, %s4048_s10  }
  0x64   : > { %s4092_s9 = sld [smem:[#allocation42_spill]] }
  0x6a   : > { %s2962_s12 = scalar_lea.hbm %s4092_s9, 1024 }
  0x6b   : > { %p2963_p11 = scmp.ne.s32.totalorder %s4092_s9, %s2962_s12  ;;  %p2969_p0 = scmp.lt.u32.totalorder %s2962_s12, %s4092_s9 }
  0x6d   : > { %p2965_p12 = pnand %p2963_p11, %p3490_p8 }
  0x6f   : > { %p2966_p13 = pneg %p2965_p12 }
  0x71   : > { %p2971_p3 = pnand %p2969_p0, %p2966_p13 }
  0x73   : > { %2974 = shalt.err (!%p2971_p3)
}
  0x74   : > { %s2975_s17 = scalar_lea.vmem %s3480_s14, 1024  ;;  %p2983_p2 = scmp.lt.s32.totalorder %s3480_s14, %s3480_s14 }
  0x75   : > { %p2976_p5 = scmp.ne.s32.totalorder %s3480_s14, %s2975_s17  ;;  %p2984_p10 = scmp.lt.s32.totalorder %s2975_s17, %s2975_s17 }
  0x77   : > { %p2978_p7 = pnand %p2976_p5, %p3490_p8  ;;  %p2985_p11 = por %p2984_p10, %p2983_p2 }
  0x79   : > { %p2979_p9 = pneg %p2978_p7 }
  0x7b   : > { %p2986_p12 = pnand %p2985_p11, %p2979_p9 }
  0x7d   : > { %2989 = shalt.err (!%p2986_p12)
}
  0x7e   : > { %2673 = dma.hbm_to_vmem [thread:$0]  (!%p3474_p6), %s4092_s9, 1024, %s3480_s14, [#allocation14], %s4047_s6, %s4047_s6, %s4048_s10  }
  0x7f   : > { %s3283_s2 = smov [#allocation12]   ;;  %s3284_s27 = smov [#allocation15]  }
  0x80   : > { %s544_s23 = sshll.u32 %s3283_s2, 4  ;;  %s582_s12 = sshll.u32 %s3284_s27, 4  ;;  %s545_s23 = int_to_ptr.vmem [resolvable:$true] %s544_s23  ;;  %s3566_s12 = int_to_ptr.vmem [resolvable:$true] %s582_s12 }
  0x81   : > { %s4093_s7 = sld [smem:[#allocation40_spill]] }
  0x87   : > { %s2990_s18 = scalar_lea.hbm %s4093_s7, 1024 }
  0x88   : > { %p2991_p13 = scmp.ne.s32.totalorder %s4093_s7, %s2990_s18  ;;  %p2997_p5 = scmp.lt.u32.totalorder %s2990_s18, %s4093_s7 }
  0x8a   : > { %p2993_p0 = pnand %p2991_p13, %p3490_p8 }
  0x8c   : > { %p2994_p3 = pneg %p2993_p0 }
  0x8e   : > { %p2999_p7 = pnand %p2997_p5, %p2994_p3 }
  0x90   : > { %3002 = shalt.err (!%p2999_p7)
}
  0x91   : > { %s3003_s0 = scalar_lea.vmem %s545_s23, 1024  ;;  %p3011_p11 = scmp.lt.s32.totalorder %s545_s23, %s545_s23 }
  0x92   : > { %p3004_p9 = scmp.ne.s32.totalorder %s545_s23, %s3003_s0  ;;  %p3012_p12 = scmp.lt.s32.totalorder %s3003_s0, %s3003_s0 }
  0x94   : > { %p3006_p2 = pnand %p3004_p9, %p3490_p8  ;;  %p3013_p1 = por %p3012_p12, %p3011_p11 }
  0x96   : > { %p3007_p10 = pneg %p3006_p2 }
  0x98   : > { %p3014_p4 = pnand %p3013_p1, %p3007_p10 }
  0x9a   : > { %3017 = shalt.err (!%p3014_p4)
}
  0x9b   : > { %2670 = dma.hbm_to_vmem [thread:$0]  (!%p3474_p6), %s4093_s7, 1024, %s545_s23, [#allocation11], %s4047_s6, %s4047_s6, %s4048_s10  }
  0x9c   : > { %s4094_s13 = sld [smem:[#allocation46_spill]] }
  0xa2   : > { %s3018_s18 = scalar_lea.hbm %s4094_s13, 2048 }
  0xa3   : > { %p3019_p13 = scmp.ne.s32.totalorder %s4094_s13, %s3018_s18  ;;  %p3025_p0 = scmp.lt.u32.totalorder %s3018_s18, %s4094_s13 }
  0xa5   : > { %p3021_p1 = pnand %p3019_p13, %p3490_p8 }
  0xa7   : > { %p3022_p4 = pneg %p3021_p1 }
  0xa9   : > { %p3027_p3 = pnand %p3025_p0, %p3022_p4 }
  0xab   : > { %3030 = shalt.err (!%p3027_p3)
}
  0xac   : > { %s3031_s23 = scalar_lea.vmem %s3566_s12, 2048  ;;  %p3039_p2 = scmp.lt.s32.totalorder %s3566_s12, %s3566_s12 }
  0xad   : > { %p3032_p5 = scmp.ne.s32.totalorder %s3566_s12, %s3031_s23  ;;  %p3040_p10 = scmp.lt.s32.totalorder %s3031_s23, %s3031_s23 }
  0xaf   : > { %p3034_p7 = pnand %p3032_p5, %p3490_p8  ;;  %p3041_p11 = por %p3040_p10, %p3039_p2 }
  0xb1   : > { %p3035_p9 = pneg %p3034_p7 }
  0xb3   : > { %p3042_p12 = pnand %p3041_p11, %p3035_p9 }
  0xb5   : > { %3045 = shalt.err (!%p3042_p12)
}
  0xb6   : > { %s4049_s0 = smov 128   ;;  %s4051_s2 = smov 8  }
  0xb7   : > { %2676 = dma.hbm_to_vmem [thread:$0]  (!%p3474_p6), %s4094_s13, 2048, %s3566_s12, [#allocation14], %s4049_s0, %s4049_s0, %s4051_s2  }
  0xb8   : > { %s3287_s16 = smov [#allocation16]   ;;  %s4095_s15 = sld [smem:[#allocation48_spill]] }
  0xb9   : > { %s598_s18 = sshll.u32 %s3287_s16, 4  ;;  %s599_s18 = int_to_ptr.vmem [resolvable:$true] %s598_s18 }
  0xbe   : > { %s3046_s29 = scalar_lea.hbm %s4095_s15, 2048 }
  0xbf   : > { %p3047_p13 = scmp.ne.s32.totalorder %s4095_s15, %s3046_s29  ;;  %p3053_p0 = scmp.lt.u32.totalorder %s3046_s29, %s4095_s15 }
  0xc1   : > { %p3049_p1 = pnand %p3047_p13, %p3490_p8 }
  0xc3   : > { %p3050_p4 = pneg %p3049_p1 }
  0xc5   : > { %p3055_p3 = pnand %p3053_p0, %p3050_p4 }
  0xc7   : > { %3058 = shalt.err (!%p3055_p3)
}
  0xc8   : > { %s3059_s12 = scalar_lea.vmem %s599_s18, 2048  ;;  %p3067_p2 = scmp.lt.s32.totalorder %s599_s18, %s599_s18 }
  0xc9   : > { %p3060_p5 = scmp.ne.s32.totalorder %s599_s18, %s3059_s12  ;;  %p3068_p10 = scmp.lt.s32.totalorder %s3059_s12, %s3059_s12 }
  0xcb   : > { %p3062_p7 = pnand %p3060_p5, %p3490_p8  ;;  %p3069_p11 = por %p3068_p10, %p3067_p2 }
  0xcd   : > { %p3063_p9 = pneg %p3062_p7 }
  0xcf   : > { %p3070_p12 = pnand %p3069_p11, %p3063_p9 }
  0xd1   : > { %3073 = shalt.err (!%p3070_p12)
}
  0xd2   : > { %s4096_s27 = smov 4   ;;  %s4097_s28 = smov 64  }
  0xd3   : > { %2679 = dma.hbm_to_vmem [thread:$0]  (!%p3474_p6), %s4095_s15, 2048, %s599_s18, [#allocation17], %s4097_s28, %s4097_s28, %s4096_s27  }
  0xd4   : > { %s2313_s8 = sadd.s32 4294967294, %s3276_s3   ;;  %s50_s19 = sadd.s32 1, %s3268_s24 }
  0xd5   : > { %s4098_s16 = sld [smem:[#allocation26_spill]]  ;;  %s53_s4 = sadd.s32 1, %s3272_s25 }
  0xd6   : > { %p51_p8 = scmp.ge.s32.totalorder %s50_s19, 2  ;;  %s60_s17 = sadd.s32 1, %s3256_s22 }
  0xd7   : > { %p67_p13 = scmp.ne.s32.totalorder %s3256_s22, %s3252_s1  ;;  %p68_p1 = scmp.eq.s32.totalorder %s3276_s3, 0 }
  0xd8   : > { %s4155_s19 = smov (%p51_p8, %s50_s19), 0  ;;  %s4157_s4 = smov (!%p51_p8, %s53_s4), %s3272_s25 }
  0xd9   : > { %4099 = sst [smem:[#allocation31_spill]] %s4155_s19  ;;  %p3646_p4 = por %p68_p1, %p67_p13 }
  0xda   : > { %p73_p6 = scmp.ne.s32.totalorder %s3252_s1, %s3248_s21  ;;  %p55_p0 = scmp.ge.s32.totalorder %s4157_s4, 2 }
  0xdb   : > { %s472_s29 = ssub.s32 %s3268_s24, %s4155_s19  ;;  %p4101_p3 = scmp.eq.s32.totalorder %s3458_s26, 0 }
  0xdc   : > { %s476_s23 = sadd.s32 1, %s3244_s20  ;;  %s4159_s4 = smov (%p55_p0, %s4157_s4), 0 }
  0xdd   : > { %p3656_p5 = por %p4101_p3, %p73_p6  ;;  %4103 = sst [smem:[#allocation32_spill]] %s4159_s4 }
  0xde   : > { %p486_p7 = scmp.ne.s32.totalorder %s3244_s20, %s3240_s30  ;;  %p492_p9 = scmp.ne.s32.totalorder %s3240_s30, %s4098_s16 }
  0xdf   : > { %s57_s12 = ssub.s32 %s3272_s25, %s4159_s4  ;;  %p493_p2 = scmp.eq.s32.totalorder %s2313_s8, 3 }
  0xe0   : > { %p58_p10 = scmp.eq.s32.totalorder %s57_s12, 0  ;;  %s473_s21 = sor.u32 %s472_s29, %s57_s12 }
  0xe1   : > { %p474_p11 = scmp.eq.s32.totalorder %s473_s21, 0  ;;  %p4104_p12 = scmp.eq.s32.totalorder %s3458_s26, 3 }
  0xe2   : > { %s3676_s28 = scalar_select %p58_p10, %s3256_s22, %s60_s17  }
  0xe3   : > { %p3671_p8 = por %p4104_p12, %p486_p7  ;;  %p3681_p13 = por %p493_p2, %p492_p9 }
  0xe4   : > { %s3679_s6 = scalar_select %p474_p11, %s3244_s20, %s476_s23  }
  0xe5   : > { %s4105_s27 = scalar_select %p3671_p8, 1, 0 }
  0xe6   : > { %s4106_s10 = scalar_select %p3681_p13, 1, 0 }
  0xe7   : > { %p2697_p1 = scmp.lt.s32.totalorder %s3276_s3, 4  ;;  %s621_s16 = sand.u32 1, %s3256_s22  }
  0xe8   : > { %s2427_s0 = sshll.u32 %s3272_s25, 8  ;;  %s3688_s8 = sshll.u32 %s621_s16, 4 }
  0xe9   : > { %s4107_s21 = sld [smem:[#allocation33_spill]]  ;;  %s625_s17 = scalar_lea.vmem [#allocation4], %s3688_s8 }
  0xea   : > { %s632_s23 = sshll.u32 %s625_s17, 4  ;;  %p3698_p6 = pnand %p2697_p1, %p3646_p4  ;;  %s3702_s23 = int_to_ptr.vmem [resolvable:$true] %s632_s23 }
  0xeb   : > { %s4110_s12 = sld [smem:[#allocation34_spill]]  ;;  %s3709_s11 = scalar_lea.sflag [#allocation5], %s621_s16 }
  0xec   : > { %p3076_p3 = pneg %p3698_p6 }
  0xef   : > { %s4108_s2 = smov %s4107_s21  ;;  %s3693_s5 = scalar_lea.hbm %s4107_s21, %s2427_s0 }
  0xf0   : > { %s3074_s13 = scalar_lea.hbm %s3693_s5, 256  ;;  %s3079_s15 = scalar_lea.hbm %s4108_s2, 512 }
  0xf1   : > { %s3707_s21 = scalar_lea.hbm %s4110_s12, %s2427_s0  ;;  %p3075_p0 = scmp.ne.s32.totalorder %s3693_s5, %s3074_s13 }
  0xf2   : > { %p3080_p9 = scmp.lt.u32.totalorder %s3693_s5, %s4108_s2  ;;  %p3081_p2 = scmp.lt.u32.totalorder %s3079_s15, %s3074_s13 }
  0xf3   : > { %p3077_p4 = pnand %p3076_p3, %p3075_p0  ;;  %p3083_p11 = scmp.lt.u32.totalorder %s3074_s13, %s3693_s5 }
  0xf4   : > { %p3082_p10 = por %p3081_p2, %p3080_p9 }
  0xf5   : > { %p3078_p7 = pneg %p3077_p4 }
  0xf6   : > { %p3084_p12 = por %p3083_p11, %p3082_p10 }
  0xf8   : > { %p3085_p1 = pnand %p3084_p12, %p3078_p7 }
  0xfa   : > { %3088 = shalt.err (!%p3085_p1)
}
  0xfb   : > { %s3089_s9 = scalar_lea.vmem %s3702_s23, 256  ;;  %s3288_s0 = smov [#allocation4]  }
  0xfc   : > { %p3090_p0 = scmp.ne.s32.totalorder %s3702_s23, %s3089_s9  ;;  %s3094_s16 = sshll.u32 %s3288_s0, 4  ;;  %s3095_s16 = int_to_ptr.vmem [resolvable:$false] %s3094_s16 }
  0xfd   : > { %s3096_s19 = scalar_lea.vmem %s3095_s16, 512  ;;  %p3097_p8 = scmp.lt.s32.totalorder %s3702_s23, %s3095_s16 }
  0xfe   : > { %p3092_p4 = pnand %p3090_p0, %p3076_p3  ;;  %p3098_p9 = scmp.lt.s32.totalorder %s3096_s19, %s3089_s9 }
 0x100   : > { %p3093_p13 = pneg %p3092_p4  ;;  %p3099_p2 = por %p3098_p9, %p3097_p8 }
 0x102   : > { %p3100_p10 = pnand %p3099_p2, %p3093_p13 }
 0x104   : > { %3103 = shalt.err (!%p3100_p10)
}
 0x105   : > { %s4111_s13 = smov 8   ;;  %s4112_s15 = smov 128  }
 0x106   : > { %2683 = dma.hbm_to_vmem [thread:$0]  (!%p3698_p6), %s3693_s5, 256, %s3702_s23, %s3709_s11, %s4112_s15, %s4112_s15, %s4111_s13  }
 0x107   : > { %s646_s4 = scalar_lea.vmem [#allocation7], %s3688_s8  ;;  %s642_s18 = sand.u32 1, %s3276_s3  }
 0x108   : > { %s653_s29 = sshll.u32 %s646_s4, 4  ;;  %s3744_s17 = scalar_lea.sflag [#allocation8], %s642_s18  ;;  %s3742_s29 = int_to_ptr.vmem [resolvable:$true] %s653_s29 }
 0x109   : > { %s3104_s9 = scalar_lea.hbm %s3707_s21, 256  ;;  %s3109_s19 = scalar_lea.hbm %s4110_s12, 512 }
 0x10a   : > { %p3105_p8 = scmp.ne.s32.totalorder %s3707_s21, %s3104_s9  ;;  %p3110_p11 = scmp.lt.u32.totalorder %s3707_s21, %s4110_s12 }
 0x10b   : > { %p3111_p12 = scmp.lt.u32.totalorder %s3109_s19, %s3104_s9  ;;  %p3113_p0 = scmp.lt.u32.totalorder %s3104_s9, %s3707_s21 }
 0x10c   : > { %p3107_p13 = pnand %p3105_p8, %p3076_p3 }
 0x10d   : > { %p3112_p1 = por %p3111_p12, %p3110_p11 }
 0x10e   : > { %p3108_p7 = pneg %p3107_p13 }
 0x10f   : > { %p3114_p4 = por %p3113_p0, %p3112_p1 }
 0x111   : > { %p3115_p9 = pnand %p3114_p4, %p3108_p7 }
 0x113   : > { %3118 = shalt.err (!%p3115_p9)
}
 0x114   : > { %s3119_s5 = scalar_lea.vmem %s3742_s29, 256  ;;  %s3289_s11 = smov [#allocation7]  }
 0x115   : > { %p3120_p2 = scmp.ne.s32.totalorder %s3742_s29, %s3119_s5  ;;  %s3124_s8 = sshll.u32 %s3289_s11, 4  ;;  %s3125_s8 = int_to_ptr.vmem [resolvable:$false] %s3124_s8 }
 0x116   : > { %s3126_s25 = scalar_lea.vmem %s3125_s8, 512  ;;  %p3127_p13 = scmp.lt.s32.totalorder %s3742_s29, %s3125_s8 }
 0x117   : > { %p3122_p10 = pnand %p3120_p2, %p3076_p3  ;;  %p3128_p11 = scmp.lt.s32.totalorder %s3126_s25, %s3119_s5 }
 0x119   : > { %p3123_p8 = pneg %p3122_p10  ;;  %p3129_p12 = por %p3128_p11, %p3127_p13 }
 0x11b   : > { %p3130_p1 = pnand %p3129_p12, %p3123_p8 }
 0x11d   : > { %3133 = shalt.err (!%p3130_p1)
}
 0x11e   : > { %2686 = dma.hbm_to_vmem [thread:$0]  (!%p3698_p6), %s3707_s21, 256, %s3742_s29, %s3744_s17, %s4112_s15, %s4112_s15, %s4111_s13  }
 0x11f   : > { %s4113_s2 = sld [smem:[#allocation30_spill]] }
 0x125   : > { %p4114_p3 = scmp.ne.s32.totalorder %s4113_s2, 0 }
 0x126   : > { %s673_s23 = sand.u32 (!%p4114_p3), 1, %s3252_s1  }
 0x127   : > { %671 = sbr.rel (%p4114_p3) target bundleno = 3237 (0xca5), region = 96  ;;  %s2329_s4 = sshll.u32 (!%p4114_p3), %s673_s23, 4 }
 0x128   : > { %s674_s18 = scalar_lea.sflag (!%p4114_p3), [#allocation5], %s673_s23  ;;  %s3776_s9 = scalar_lea.vmem (!%p4114_p3), [#allocation4], %s2329_s4 }
 0x12e   : > { %3207 = dma.done.wait (%p3656_p5), %s674_s18, 256  }
 0x12f   : > { %3209 = vsyncadd (%p3656_p5), %s674_s18, 4294967040  ;;  %s682_s7 = sand.u32 1, %s3458_s26   ;;  %s3783_s21 = scalar_lea.vmem [#allocation7], %s2329_s4 }
 0x130   : > { %s683_s0 = scalar_lea.sflag [#allocation8], %s682_s7 }
 0x131   : > { %3211 = dma.done.wait (%p3656_p5), %s683_s0, 256  }
 0x132   : > { %3213 = vsyncadd (%p3656_p5), %s683_s0, 4294967040  ;;  %p4115_p6 = scmp.eq.s32.totalorder %s3458_s26, 0 }
 0x134   : > { %3215 = dma.done.wait (%p4115_p6), [#allocation8], 1024   ;;  %p4116_p7 = pmov %p4115_p6 }
 0x135   : > { %p4117_p0 = pmov %p4115_p6 }
 0x136   : > { %3217 = vsyncadd (%p4116_p7), [#allocation8], 4294966272 }
 0x137   : > { %3219 = dma.done.wait (%p4117_p0), [#allocation11], 2048   ;;  %p4118_p4 = pmov %p4117_p0 }
 0x138   : > { %p4119_p9 = pmov %p4117_p0 }
 0x139   : > { %3221 = vsyncadd (%p4118_p4), [#allocation11], 4294965248 }
 0x13a   : > { %3223 = dma.done.wait (%p4119_p9), [#allocation14], 3072   ;;  %p4120_p2 = pmov %p4117_p0 }
 0x13b   : > { %p4121_p5 = pmov %p4117_p0 }
 0x13c   : > { %3225 = vsyncadd (%p4120_p2), [#allocation14], 4294964224 }
 0x13d   : > { %3227 = dma.done.wait (%p4121_p5), [#allocation17], 2048   ;;  %p4122_p10 = pmov %p4117_p0 }
 0x13e   : > { %s4123_s14 = sld [smem:[#allocation28_spill]]  ;;  %s770_s13 = sand.u32 1, %s3240_s30  }
 0x13f   : > { %3229 = vsyncadd (%p4122_p10), [#allocation17], 4294965248  ;;  %s3809_s15 = sshll.u32 %s770_s13, 3  ;;  %s4124_s16 = sld [smem:[#allocation35_spill]] }
 0x140   : > { %s772_s5 = scalar_lea.vmem [#allocation18], %s3809_s15  ;;  %s4125_s26 = sld [smem:[#allocation27_spill]] }
 0x144   : > { %p773_p8 = scmp.lt.s32.totalorder %s4123_s14, 1 }
 0x146   : > { %s4161_s14 = smov (!%p773_p8, %s4123_s14), 1  ;;  %p2338_p13 = scmp.ne.s32.totalorder %s4125_s26, 0 }
 0x147   : > { %s775_s19 = scalar_lea.vmem %s4124_s16, %s4161_s14  ;;  %v2814_v0 = vld [vmem:[#allocation10] sm:$0xff] (!%p2338_p13)   ;;  %v3290_v1 = vmov (!%p2338_p13), 0.0   ;;  %v2816_v3 = vld [vmem:[#allocation10 + $0x8] sm:$0xff] (!%p2338_p13)   ;;  %vm3291_vm0 = vmmov (!%p2338_p13), 0   ;;  %v2818_v5 = vld [vmem:[#allocation10 + $0x10] sm:$0xff] (!%p2338_p13)   ;;  %s4126_s25 = sld [smem:[#allocation41_spill]] (!%p2338_p13) }
 0x148   : > { %780 = sbr.rel (%p2338_p13) target bundleno = 702 (0x2be), region = 132  ;;  %2503 = vmatprep.subr.bf16.mxu0 (!%p2338_p13), %v3290_v1  ;;  %2523 = vmatprep.subr.bf16.mxu1 (!%p2338_p13), %v3290_v1  ;;  %v2815_v2 = vld [vmem:[#allocation12] sm:$0xff] (!%p2338_p13)   ;;  %v2817_v4 = vld [vmem:[#allocation12 + $0x8] sm:$0xff] (!%p2338_p13)   ;;  %v2819_v6 = vld [vmem:[#allocation12 + $0x10] sm:$0xff] (!%p2338_p13)   ;;  %s4127_s4 = sld [smem:[#allocation39_spill]] (!%p2338_p13)  ;;  %vm1014_vm1 = vcmask (!%p2338_p13), 261120  }
 0x149   : > { %2504 = vmatpush3.bf16.msra.mxu0 (!%p2338_p13), %v2814_v0  ;;  %2519 = vmatprep.mubr.msk.bf16.mxu0 (!%p2338_p13), %vm3291_vm0, %v3290_v1  ;;  %v2820_v7 = vld [vmem:[#allocation10 + $0x18] sm:$0xff] (!%p2338_p13)   ;;  %v2822_v9 = vld [vmem:[#allocation10 + $0x20] sm:$0xff] (!%p2338_p13)   ;;  %v2824_v11 = vld [vmem:[#allocation10 + $0x28] sm:$0xff] (!%p2338_p13)   ;;  %s3292_s18 = smov (!%p2338_p13), 64   ;;  %s3293_s7 = smov (!%p2338_p13), 96  }
 0x14a   : > { %2524 = vmatpush3.bf16.msra.mxu1 (!%p2338_p13), %v2815_v2  ;;  %2505 = vmatprep.subr.bf16.mxu0 (!%p2338_p13), %v3290_v1  ;;  %v2821_v8 = vld [vmem:[#allocation12 + $0x18] sm:$0xff] (!%p2338_p13)   ;;  %v2823_v10 = vld [vmem:[#allocation12 + $0x20] sm:$0xff] (!%p2338_p13)   ;;  %v2825_v12 = vld [vmem:[#allocation12 + $0x28] sm:$0xff] (!%p2338_p13)   ;;  %s3294_s0 = smov (!%p2338_p13), 32  }
 0x14b   : > { %2525 = vmatprep.subr.bf16.mxu1 (!%p2338_p13), %v3290_v1  ;;  %2539 = vmatprep.mubr.msk.bf16.mxu1 (!%p2338_p13), %vm3291_vm0, %v3290_v1  ;;  %v2826_v13 = vld [vmem:[#allocation10 + $0x30] sm:$0xff] (!%p2338_p13)   ;;  %v782_v15 = vld [vmem:[%s3776_s9 + $0x8] sm:$0xff] (!%p2338_p13) }
 0x14c   : > { %v781_v14 = vld [vmem:[%s3776_s9] sm:$0xff] (!%p2338_p13)  ;;  %v784_v17 = vld [vmem:[%s3783_s21 + $0x8] sm:$0xff] (!%p2338_p13) }
 0x14d   : > { %2506 = vmatpush3.bf16.msra.mxu0 (!%p2338_p13), %v2816_v3  ;;  %v783_v16 = vld [vmem:[%s3783_s21] sm:$0xff] (!%p2338_p13)  ;;  %v786_v20 = vadd.f32 (!%p2338_p13), %v784_v17, %v782_v15  ;;  %v2828_v21 = vld [vmem:[#allocation10 + $0x38] sm:$0xff] (!%p2338_p13)   ;;  %v900_v24 = vpack.c.bf16 (!%p2338_p13), %v782_v15, %v781_v14 }
 0x14e   : > { %2526 = vmatpush3.bf16.msra.mxu1 (!%p2338_p13), %v2817_v4  ;;  %2507 = vmatprep.subr.bf16.mxu0 (!%p2338_p13), %v3290_v1  ;;  %v2827_v18 = vld [vmem:[#allocation12 + $0x30] sm:$0xff] (!%p2338_p13)   ;;  %v785_v19 = vadd.f32 (!%p2338_p13), %v783_v16, %v781_v14  ;;  %v2829_v22 = vld [vmem:[#allocation12 + $0x38] sm:$0xff] (!%p2338_p13)   ;;  %v2348_v25 = vld [vmem:[%s4126_s25] ss:$0 sm:$0xff] (!%p2338_p13) }
 0x14f   : > { %2527 = vmatprep.subr.bf16.mxu1 %v3290_v1  ;;  %v2339_v26 = vld [vmem:[%s4127_s4] ss:$0 sm:$0xff] }
 0x150   : > { %v787_v23 = vpack.c.bf16 %v786_v20, %v785_v19 }
 0x151   : > { %2508 = vmatpush3.bf16.msra.mxu0 %v2818_v5 }
 0x152   : > { %2528 = vmatpush3.bf16.msra.mxu1 %v2819_v6  ;;  %2509 = vmatprep.subr.bf16.mxu0 %v3290_v1 }
 0x153   : > { %2529 = vmatprep.subr.bf16.mxu1 %v3290_v1 }
 0x155   : > { %2510 = vmatpush3.bf16.msra.mxu0 %v2820_v7 }
 0x156   : > { %2530 = vmatpush3.bf16.msra.mxu1 %v2821_v8  ;;  %2511 = vmatprep.subr.bf16.mxu0 %v3290_v1 }
 0x157   : > { %2531 = vmatprep.subr.bf16.mxu1 %v3290_v1 }
 0x159   : > { %2512 = vmatpush3.bf16.msra.mxu0 %v2822_v9 }
 0x15a   : > { %2532 = vmatpush3.bf16.msra.mxu1 %v2823_v10  ;;  %2513 = vmatprep.subr.bf16.mxu0 %v3290_v1 }
 0x15b   : > { %2533 = vmatprep.subr.bf16.mxu1 %v3290_v1 }
 0x15d   : > { %2514 = vmatpush3.bf16.msra.mxu0 %v2824_v11 }
 0x15e   : > { %2534 = vmatpush3.bf16.msra.mxu1 %v2825_v12  ;;  %2515 = vmatprep.subr.bf16.mxu0 %v3290_v1 }
 0x15f   : > { %2535 = vmatprep.subr.bf16.mxu1 %v3290_v1 }
 0x161   : > { %2516 = vmatpush3.bf16.msra.mxu0 %v2826_v13 }
 0x162   : > { %2536 = vmatpush3.bf16.msra.mxu1 %v2827_v18  ;;  %2517 = vmatprep.subr.bf16.mxu0 %v3290_v1 }
 0x163   : > { %2537 = vmatprep.subr.bf16.mxu1 %v3290_v1 }
 0x165   : > { %2518 = vmatpush3.bf16.msra.mxu0 %v2828_v21 }
 0x166   : > { %2538 = vmatpush3.bf16.msra.mxu1 %v2829_v22 }
 0x168   : > { %2520 = vmatmul.mubr.bf16.vlgmr.msra.gmra.mrb[0].mxu0 %v787_v23 }
 0x169   : > { %2540 = vmatmul.mubr.bf16.vlgmr.msra.gmra.mrb[0].mxu1 %v900_v24 }
 0x23b   : > { %v893_v27 = vpop.f32.mrb[0].mxu0 }
 0x23c   : > { %v2521_v28 = vpop.f32.mrb[1].mxu0  ;;  %v1006_v29 = vpop.f32.mrb[0].mxu1  ;;  %v894_v33 = vadd.f32 %v2339_v26, %v893_v27 }
 0x23d   : > { %v1007_v30 = vadd.f32 %v2348_v25, %v1006_v29  ;;  %v896_v31 = vpop.f32.mrb[2].mxu0  ;;  %v2541_v32 = vpop.f32.mrb[1].mxu1 }
 0x23e   : > { %v897_v34 = vadd.f32 %v2339_v26, %v896_v31  ;;  %v2522_v35 = vpop.f32.mrb[3].mxu0  ;;  %v1009_v36 = vpop.f32.mrb[2].mxu1 }
 0x23f   : > { %v1010_v37 = vadd.f32 %v2348_v25, %v1009_v36  ;;  %v2542_v38 = vpop.f32.mrb[3].mxu1 }
 0x240   : > { %v1013_v39 = vpack.c.bf16 %v897_v34, %v894_v33 }
 0x241   : > { %v1016_v40 = vpack.c.bf16 %v1010_v37, %v1007_v30 }
 0x242   : > { %1015 = vst.msk [vmem:[#allocation2] sm:$0xff] %vm1014_vm1, %v1013_v39  ;;  %1030 = vrot.lane.b32.xlu1 %v1013_v39, %s3292_s18  ;;  %1019 = vrot.lane.b32.xlu0 %v1013_v39, %s3293_s7 }
 0x243   : > { %1017 = vst.msk [vmem:[#allocation3] sm:$0xff] %vm1014_vm1, %v1016_v40 }
 0x246   : > { %1035 = vrot.lane.b32.xlu1 %v1016_v40, %s3292_s18  ;;  %1025 = vrot.lane.b32.xlu0 %v1016_v40, %s3293_s7 }
 0x24a   : > { %1045 = vrot.lane.b32.xlu1 %v1016_v40, %s3294_s0  ;;  %1040 = vrot.lane.b32.xlu0 %v1013_v39, %s3294_s0 }
 0x2b4   : > { %v1031_v41 = vpop.permute.xlu1 %1030  ;;  %v1020_v42 = vpop.permute.xlu0 %1019 }
 0x2b5   : > { %1034 = vst.msk [vmem:[#allocation2 + $0x10] sm:$0xff] %vm1014_vm1, %v1031_v41  ;;  %1023 = vst.msk [vmem:[#allocation2 + $0x8] sm:$0xff] %vm1014_vm1, %v1020_v42 }
 0x2b8   : > { %v1036_v43 = vpop.permute.xlu1 %1035  ;;  %v1026_v44 = vpop.permute.xlu0 %1025 }
 0x2b9   : > { %1039 = vst.msk [vmem:[#allocation3 + $0x10] sm:$0xff] %vm1014_vm1, %v1036_v43  ;;  %1029 = vst.msk [vmem:[#allocation3 + $0x8] sm:$0xff] %vm1014_vm1, %v1026_v44 }
 0x2bc   : > { %v1046_v45 = vpop.permute.xlu1 %1045  ;;  %v1041_v46 = vpop.permute.xlu0 %1040 }
 0x2bd   : > { %1049 = vst.msk [vmem:[#allocation3 + $0x18] sm:$0xff] %vm1014_vm1, %v1046_v45  ;;  %1044 = vst.msk [vmem:[#allocation2 + $0x18] sm:$0xff] %vm1014_vm1, %v1041_v46 }
 0x2be PF: > { %v2830_v47 = vld [vmem:[#allocation9] sm:$0xff]   ;;  %v3295_v48 = vmov 0.0   ;;  %s4128_s29 = sld [smem:[#allocation27_spill]]  ;;  %v2831_v49 = vld [vmem:[#allocation9 + $0x8] sm:$0xff]   ;;  %vm3296_vm2 = vmmov 0   ;;  %v2832_v50 = vld [vmem:[#allocation9 + $0x10] sm:$0xff]  }
 0x2bf   : > { %2543 = vmatprep.subr.bf16.mxu0 %v3295_v48  ;;  %2563 = vmatprep.subr.bf16.mxu1 %v3295_v48  ;;  %v2833_v51 = vld [vmem:[#allocation9 + $0x18] sm:$0xff]   ;;  %v2834_v52 = vld [vmem:[#allocation9 + $0x20] sm:$0xff]   ;;  %v2835_v53 = vld [vmem:[#allocation9 + $0x28] sm:$0xff]   ;;  %vm1194_vm3 = vcmask 261120   ;;  %s4129_s11 = sld [smem:[#allocation37_spill]]  ;;  %s3297_s8 = smov 32  }
 0x2c0   : > { %2544 = vmatpush3.bf16.msra.mxu0 %v2830_v47  ;;  %2559 = vmatprep.mubr.msk.bf16.mxu0 %vm3296_vm2, %v3295_v48  ;;  %v2836_v54 = vld [vmem:[#allocation9 + $0x30] sm:$0xff]   ;;  %v2837_v57 = vld [vmem:[#allocation9 + $0x38] sm:$0xff]   ;;  %v1183_v60 = vld [vmem:[#allocation2] sm:$0xff]  ;;  %s3298_s25 = smov 96   ;;  %s3299_s2 = smov 64   ;;  %vm1379_vm4 = vcmask 130048  }
 0x2c1   : > { %2545 = vmatprep.subr.bf16.mxu0 %v3295_v48  ;;  %2565 = vmatprep.mubr.msk.bf16.mxu1 %vm3296_vm2, %v3295_v48  ;;  %v1199_v61 = vsel %vm1194_vm3, %v1183_v60, 0  ;;  %v1184_v3 = vld [vmem:[#allocation2 + $0x8] sm:$0xff]  ;;  %v1185_v8 = vld [vmem:[#allocation2 + $0x10] sm:$0xff]  ;;  %v2367_v18 = vld [vmem:[%s775_s19] ss:$0 sm:$0xff]  ;;  %vm1617_vm5 = vcmask 523264  }
 0x2c2   : > { %2564 = vmatpush3.bf16.xpose.msra.mxu1 %v1199_v61  ;;  %v1245_v7 = vsel %vm1194_vm3, %v1184_v3, 0  ;;  %v1291_v11 = vsel %vm1194_vm3, %v1185_v8, 0  ;;  %vm1619_vm6 = vcmask 785408   ;;  %s4131_s7 = sld [smem:[#allocation43_spill]]  ;;  %s4135_s4 = sld [smem:[#allocation49_spill]] }
 0x2c3   : > { %2569 = vmatprep.subr.bf16.mxu1 %v3295_v48  ;;  %s4136_s18 = sld [smem:[#allocation28_spill]]  ;;  %p4140_p12 = scmp.ne.s32.totalorder %s4105_s27, 0 }
 0x2c4   : > { %2546 = vmatpush3.bf16.msra.mxu0 %v2831_v49  ;;  %s2357_s17 = sshll.u32 %s4128_s29, 3  ;;  %v1186_v13 = vld [vmem:[#allocation2 + $0x18] sm:$0xff]  ;;  %v1428_v49 = vld [vmem:[#allocation3] sm:$0xff] }
 0x2c5   : > { %2547 = vmatprep.subr.bf16.mxu0 %v3295_v48  ;;  %s1051_s16 = scalar_lea.vmem %s3776_s9, %s2357_s17 [#allocation4]  ;;  %s1053_s26 = scalar_lea.vmem %s3783_s21, %s2357_s17 [#allocation7]  ;;  %v2358_v62 = vld [vmem:[%s4129_s11] ss:$0 sm:$0xff]  ;;  %v1337_v15 = vsel %vm1194_vm3, %v1186_v13, 0 }
 0x2c6   : > { %v3852_v55 = vld [vmem:[%s1051_s16] sm:$0xff]  ;;  %s4132_s16 = sld [smem:[#allocation44_spill]]  ;;  %s4133_s21 = sld [smem:[#allocation45_spill]] }
 0x2c7   : > { %v1054_v56 = vld [vmem:[%s1053_s26] sm:$0xff]  ;;  %s4137_s17 = sld [smem:[#allocation50_spill]]  ;;  %s4138_s9 = sld [smem:[#allocation51_spill]] }
 0x2c8   : > { %2548 = vmatpush3.bf16.msra.mxu0 %v2832_v50  ;;  %v1055_v58 = vadd.f32 %v1054_v56, %v3852_v55  ;;  %s2136_s11 = sshll.u32 %s772_s5, 4  ;;  %s3954_s11 = int_to_ptr.vmem [resolvable:$true] %s2136_s11 }
 0x2c9   : > { %2549 = vmatprep.subr.bf16.mxu0 %v3295_v48  ;;  %s2423_s14 = sshll.u32 %s4136_s18, 1  ;;  %s3301_s18 = smov [#allocation18]  }
 0x2ca   : > { %v1056_v59 = vpack.c.bf16 %v1055_v58, %v1055_v58  ;;  %s2132_s19 = sadd.s32 %s4128_s29, %s2423_s14  ;;  %s2121_s29 = scalar_lea.sflag [#allocation6], %s770_s13 }
 0x2cb   : > { %s3138_s14 = sshll.u32 %s3301_s18, 4  ;;  %s3139_s14 = int_to_ptr.vmem [resolvable:$false] %s3138_s14 }
 0x2cc   : > { %2550 = vmatpush3.bf16.msra.mxu0 %v2833_v51  ;;  %p3141_p6 = scmp.lt.s32.totalorder %s3954_s11, %s3139_s14 }
 0x2cd   : > { %2551 = vmatprep.subr.bf16.mxu0 %v3295_v48 }
 0x2d0   : > { %2552 = vmatpush3.bf16.msra.mxu0 %v2834_v52 }
 0x2d1   : > { %2553 = vmatprep.subr.bf16.mxu0 %v3295_v48 }
 0x2d4   : > { %2554 = vmatpush3.bf16.msra.mxu0 %v2835_v53 }
 0x2d5   : > { %2555 = vmatprep.subr.bf16.mxu0 %v3295_v48 }
 0x2d8   : > { %2556 = vmatpush3.bf16.msra.mxu0 %v2836_v54 }
 0x2d9   : > { %2557 = vmatprep.subr.bf16.mxu0 %v3295_v48 }
 0x2dc   : > { %2558 = vmatpush3.bf16.msra.mxu0 %v2837_v57 }
 0x2dd   : > { %2611 = vmatprep.subr.bf16.mxu0 %v3295_v48 }
 0x2df   : > { %2560 = vmatmul.mubr.bf16.vlgmr.msra.gmra.mrb[0].mxu0 %v1056_v59 }
 0x2e0   : > { %2627 = vmatprep.mubr.msk.bf16.mxu0 %vm3296_vm2, %v3295_v48 }
 0x3b2   : > { %v1162_v63 = vpop.f32.mrb[0].mxu0 }
 0x3b3   : > { %v1163_v0 = vadd.f32 %v2358_v62, %v1162_v63  ;;  %v2561_v1 = vpop.f32.mrb[1].mxu0 }
 0x3b4   : > { %v1165_v2 = vpop.f32.mrb[2].mxu0 }
 0x3b5   : > { %v1168_v4 = vmul.f32 0.17677669, %v1163_v0  ;;  %v2562_v5 = vpop.f32.mrb[3].mxu0 }
 0x3b7   : > { %1176 = vrot.lane.b32.xlu1 %v1168_v4, %s3297_s8  ;;  %1170 = vrot.lane.b32.xlu0 %v1168_v4, %s3298_s25  ;;  %v1179_v6 = vpack.c.bf16 %v1168_v4, %v1168_v4 }
 0x3b9   : > { %2566 = vmatmul.mubr.msk.bf16.vlgmr.msra.gmra.mrb[0].mxu1 %vm1194_vm3, %v1179_v6  ;;  %v1429_v6 = vld [vmem:[#allocation3 + $0x8] sm:$0xff] }
 0x3ba   : > { %2570 = vmatpush3.bf16.xpose.msra.mxu1 %v1245_v7  ;;  %2571 = vmatprep.mubr.msk.bf16.mxu1 %vm3296_vm2, %v3295_v48 }
 0x3bb   : > { %1173 = vrot.lane.b32.xlu0 %v1168_v4, %s3299_s2  ;;  %2575 = vmatprep.subr.bf16.mxu1 %v3295_v48 }
 0x429   : > { %v1171_v9 = vpop.permute.xlu0 %1170  ;;  %v1177_v16 = vpop.permute.xlu1 %1176 }
 0x42a   : > { %v1180_v10 = vpack.c.bf16 %v1171_v9, %v1171_v9  ;;  %v1182_v17 = vpack.c.bf16 %v1177_v16, %v1177_v16 }
 0x42c   : > { %2572 = vmatmul.mubr.msk.bf16.vlgmr.msra.gmra.mrb[4].mxu1 %vm1194_vm3, %v1180_v10 }
 0x42d   : > { %2576 = vmatpush3.bf16.xpose.msra.mxu1 %v1291_v11  ;;  %2577 = vmatprep.mubr.msk.bf16.mxu1 %vm3296_vm2, %v3295_v48  ;;  %v1174_v12 = vpop.permute.xlu0 %1173 }
 0x42e   : > { %2581 = vmatprep.subr.bf16.mxu1 %v3295_v48  ;;  %v1181_v14 = vpack.c.bf16 %v1174_v12, %v1174_v12  ;;  %v1430_v12 = vld [vmem:[#allocation3 + $0x10] sm:$0xff] }
 0x434   : > { %2578 = vmatmul.mubr.msk.bf16.vlgmr.msra.gmra.mrb[8].mxu1 %vm1194_vm3, %v1181_v14 }
 0x435   : > { %2582 = vmatpush3.bf16.xpose.msra.mxu1 %v1337_v15  ;;  %2583 = vmatprep.mubr.msk.bf16.mxu1 %vm3296_vm2, %v3295_v48 }
 0x436   : > { %2587 = vmatprep.subr.bf16.mxu1 %v3295_v48 }
 0x43c   : > { %2584 = vmatmul.mubr.msk.bf16.vlgmr.msra.gmra.mrb[12].mxu1 %vm1194_vm3, %v1182_v17  ;;  %v1431_v17 = vld [vmem:[#allocation3 + $0x18] sm:$0xff] }
 0x43d   : > { %2589 = vmatprep.mubr.msk.bf16.mxu1 %vm3296_vm2, %v3295_v48  ;;  %2588 = vmatpush3.bf16.msra.mxu1 %v1428_v49 }
 0x43e   : > { %2593 = vmatprep.subr.bf16.mxu1 %v3295_v48 }
 0x48c   : > { %v1235_v19 = vpop.f32.mrb[0].mxu1 }
 0x48d   : > { %v1236_v20 = vadd.f32 %v2367_v18, %v1235_v19  ;;  %v2567_v21 = vpop.f32.mrb[1].mxu1 }
 0x48e   : > { %v1238_v22 = vpop.f32.mrb[2].mxu1 }
 0x48f   : > { %v2568_v23 = vpop.f32.mrb[3].mxu1  ;;  %v1380_v24 = vsel %vm1379_vm4, %v1236_v20, -inf }
 0x490   : > { %1381 = vmax.xlane.f32.xlu1 %v1380_v24 }
 0x4ff   : > { %v1281_v25 = vpop.f32.mrb[4].mxu1 }
 0x500   : > { %v1282_v26 = vadd.f32 %v2367_v18, %v1281_v25  ;;  %v2573_v27 = vpop.f32.mrb[5].mxu1  ;;  %v2838_v25 = vld [vmem:[#allocation13] sm:$0xff]  }
 0x501   : > { %v1284_v28 = vpop.f32.mrb[6].mxu1  ;;  %2612 = vmatpush3.bf16.msra.mxu0 %v2838_v25  ;;  %v2840_v27 = vld [vmem:[#allocation13 + $0x10] sm:$0xff]   ;;  %v2879_v25 = vld [vmem:[#allocation16 + $0x20] sm:$0xff]  }
 0x502   : > { %v2574_v29 = vpop.f32.mrb[7].mxu1  ;;  %v1383_v30 = vsel %vm1379_vm4, %v1282_v26, -inf  ;;  %2613 = vmatprep.subr.bf16.mxu0 %v3295_v48  ;;  %v2841_v28 = vld [vmem:[#allocation13 + $0x18] sm:$0xff]  }
 0x503   : > { %1384 = vmax.xlane.f32.xlu0 %v1383_v30  ;;  %v2842_v29 = vld [vmem:[#allocation13 + $0x20] sm:$0xff]   ;;  %v2843_v30 = vld [vmem:[#allocation13 + $0x28] sm:$0xff]  }
 0x507   : > { %v1327_v31 = vpop.f32.mrb[8].mxu1 }
 0x508   : > { %v1328_v32 = vadd.f32 %v2367_v18, %v1327_v31  ;;  %v2579_v33 = vpop.f32.mrb[9].mxu1  ;;  %v2844_v31 = vld [vmem:[#allocation13 + $0x30] sm:$0xff]  }
 0x509   : > { %v1330_v34 = vpop.f32.mrb[10].mxu1 }
 0x50a   : > { %v2580_v35 = vpop.f32.mrb[11].mxu1  ;;  %v1386_v36 = vsel %vm1379_vm4, %v1328_v32, -inf }
 0x50b   : > { %1387 = vmax.xlane.f32.xlu0 %v1386_v36  ;;  %v2845_v35 = vld [vmem:[#allocation13 + $0x38] sm:$0xff]  }
 0x50f   : > { %v1373_v37 = vpop.f32.mrb[12].mxu1 }
 0x510   : > { %v1374_v38 = vadd.f32 %v2367_v18, %v1373_v37  ;;  %v2585_v39 = vpop.f32.mrb[13].mxu1 }
 0x511   : > { %v1376_v40 = vpop.f32.mrb[14].mxu1 }
 0x512   : > { %v2586_v41 = vpop.f32.mrb[15].mxu1  ;;  %v1389_v42 = vsel %vm1379_vm4, %v1374_v38, -inf }
 0x513   : > { %1390 = vmax.xlane.f32.xlu1 %v1389_v42 }
 0x51d   : > { %v1382_v43 = vpop.xlane.xlu1 %1381 }
 0x51e   : > { %v1392_v44 = vsub.f32 %v1236_v20, %v1382_v43 }
 0x520   : > { %v1396_v45 = vmul.f32 1.442695, %v1392_v44 }
 0x522   : > { %2886 = vpow2.f32 %v1396_v45 }
 0x52c   : > { %v2887_v46 = vpop.eup %2886 }
 0x52d   : > { %v1404_v47 = vsel %vm1379_vm4, %v2887_v46, 0.0 }
 0x52e   : > { %1405 = vadd.xlane.f32.xlu0 %v1404_v47 }
 0x590   : > { %v1385_v50 = vpop.xlane.xlu0 %1384 }
 0x591   : > { %v1393_v51 = vsub.f32 %v1282_v26, %v1385_v50  ;;  %v2839_v26 = vld [vmem:[#allocation13 + $0x8] sm:$0xff]  }
 0x592   : > { %2614 = vmatpush3.bf16.msra.mxu0 %v2839_v26  ;;  %v2880_v26 = vld [vmem:[#allocation16 + $0x68] sm:$0xff]  }
 0x593   : > { %v1398_v52 = vmul.f32 1.442695, %v1393_v51  ;;  %2615 = vmatprep.subr.bf16.mxu0 %v3295_v48 }
 0x595   : > { %2888 = vpow2.f32 %v1398_v52  ;;  %v2376_v52 = vld [vmem:[%s4131_s7] ss:$0 sm:$0xff] }
 0x596   : > { %2616 = vmatpush3.bf16.msra.mxu0 %v2840_v27  ;;  %v2881_v27 = vld [vmem:[#allocation16 + $0x28] sm:$0xff]  }
 0x597   : > { %2617 = vmatprep.subr.bf16.mxu0 %v3295_v48 }
 0x598   : > { %v1388_v53 = vpop.xlane.xlu0 %1387 }
 0x599   : > { %v1394_v54 = vsub.f32 %v1328_v32, %v1388_v53 }
 0x59a   : > { %2618 = vmatpush3.bf16.msra.mxu0 %v2841_v28 }
 0x59b   : > { %v1400_v56 = vmul.f32 1.442695, %v1394_v54  ;;  %2619 = vmatprep.subr.bf16.mxu0 %v3295_v48 }
 0x59d   : > { %2890 = vpow2.f32 %v1400_v56 }
 0x59e   : > { %2620 = vmatpush3.bf16.msra.mxu0 %v2842_v29 }
 0x59f   : > { %v2889_v57 = vpop.eup %2888  ;;  %2621 = vmatprep.subr.bf16.mxu0 %v3295_v48 }
 0x5a0   : > { %v1391_v58 = vpop.xlane.xlu1 %1390  ;;  %v1407_v59 = vsel %vm1379_vm4, %v2889_v57, 0.0 }
 0x5a1   : > { %v1395_v60 = vsub.f32 %v1374_v38, %v1391_v58  ;;  %1408 = vadd.xlane.f32.xlu1 %v1407_v59 }
 0x5a2   : > { %2622 = vmatpush3.bf16.msra.mxu0 %v2843_v30 }
 0x5a3   : > { %v1402_v61 = vmul.f32 1.442695, %v1395_v60  ;;  %2623 = vmatprep.subr.bf16.mxu0 %v3295_v48  ;;  %v2846_v60 = vld [vmem:[#allocation15] ss:$8 sps:$4 sm:$0xff]  }
 0x5a5   : > { %2892 = vpow2.f32 %v1402_v61  ;;  %v2848_v61 = vld [vmem:[#allocation15 + $0x4] ss:$8 sps:$4 sm:$0xff]  }
 0x5a6   : > { %2624 = vmatpush3.bf16.msra.mxu0 %v2844_v31 }
 0x5a7   : > { %v2891_v62 = vpop.eup %2890  ;;  %2625 = vmatprep.subr.bf16.mxu0 %v3295_v48 }
 0x5a8   : > { %v1410_v63 = vsel %vm1379_vm4, %v2891_v62, 0.0 }
 0x5a9   : > { %1411 = vadd.xlane.f32.xlu0 %v1410_v63  ;;  %v2849_v63 = vld [vmem:[#allocation15 + $0x10] ss:$8 sps:$4 sm:$0xff]  }
 0x5aa   : > { %2626 = vmatpush3.bf16.msra.mxu0 %v2845_v35 }
 0x5af   : > { %v2893_v0 = vpop.eup %2892 }
 0x5b0   : > { %v1413_v1 = vsel %vm1379_vm4, %v2893_v0, 0.0 }
 0x5b1   : > { %1414 = vadd.xlane.f32.xlu1 %v1413_v1  ;;  %v2852_v1 = vld [vmem:[#allocation15 + $0x20] ss:$8 sps:$4 sm:$0xff]  }
 0x5bb   : > { %v1406_v2 = vpop.xlane.xlu0 %1405 }
 0x5bc   : > { %2894 = vrcp.f32 %v1406_v2 }
 0x5c6   : > { %v2895_v3 = vpop.eup %2894 }
 0x5c7   : > { %v1420_v4 = vmul.f32 %v2895_v3, %v2887_v46 }
 0x5c9   : > { %v1424_v5 = vpack.c.bf16 %v1420_v4, %v1420_v4 }
 0x5cb   : > { %2590 = vmatmul.mubr.msk.bf16.vlgmr.msra.gmra.mrb[16].mxu1 %vm1379_vm4, %v1424_v5 }
 0x5cc   : > { %2594 = vmatpush3.bf16.msra.mxu1 %v1429_v6  ;;  %2595 = vmatprep.mubr.msk.bf16.mxu1 %vm3296_vm2, %v3295_v48  ;;  %v2857_v6 = vld [vmem:[#allocation15 + $0x34] ss:$8 sps:$4 sm:$0xff]  }
 0x5cd   : > { %2599 = vmatprep.subr.bf16.mxu1 %v3295_v48 }
 0x62e   : > { %v1409_v7 = vpop.xlane.xlu1 %1408 }
 0x62f   : > { %2896 = vrcp.f32 %v1409_v7  ;;  %v2860_v7 = vld [vmem:[#allocation15 + $0x44] ss:$8 sps:$4 sm:$0xff]  }
 0x636   : > { %v1412_v8 = vpop.xlane.xlu0 %1411 }
 0x637   : > { %2898 = vrcp.f32 %v1412_v8  ;;  %v2858_v8 = vld [vmem:[#allocation15 + $0x40] ss:$8 sps:$4 sm:$0xff]  }
 0x639   : > { %v2897_v9 = vpop.eup %2896 }
 0x63a   : > { %v1421_v10 = vmul.f32 %v2897_v9, %v2889_v57  ;;  %v2863_v9 = vld [vmem:[#allocation15 + $0x54] ss:$8 sps:$4 sm:$0xff]  }
 0x63c   : > { %v1425_v11 = vpack.c.bf16 %v1421_v10, %v1421_v10  ;;  %v2861_v10 = vld [vmem:[#allocation15 + $0x50] ss:$8 sps:$4 sm:$0xff]  }
 0x63e   : > { %2596 = vmatmul.mubr.msk.bf16.vlgmr.msra.gmra.mrb[20].mxu1 %vm1379_vm4, %v1425_v11  ;;  %v1415_v13 = vpop.xlane.xlu1 %1414  ;;  %v2866_v11 = vld [vmem:[#allocation15 + $0x64] ss:$8 sps:$4 sm:$0xff]  }
 0x63f   : > { %2600 = vmatpush3.bf16.msra.mxu1 %v1430_v12  ;;  %2900 = vrcp.f32 %v1415_v13  ;;  %2601 = vmatprep.mubr.msk.bf16.mxu1 %vm3296_vm2, %v3295_v48  ;;  %v2864_v12 = vld [vmem:[#allocation15 + $0x60] ss:$8 sps:$4 sm:$0xff]   ;;  %v2869_v13 = vld [vmem:[#allocation15 + $0x74] ss:$8 sps:$4 sm:$0xff]  }
 0x640   : > { %2605 = vmatprep.subr.bf16.mxu1 %v3295_v48 }
 0x641   : > { %v2899_v14 = vpop.eup %2898 }
 0x642   : > { %v1422_v15 = vmul.f32 %v2899_v14, %v2891_v62  ;;  %v2851_v62 = vld [vmem:[#allocation15 + $0x14] ss:$8 sps:$4 sm:$0xff]   ;;  %v2867_v14 = vld [vmem:[#allocation15 + $0x70] ss:$8 sps:$4 sm:$0xff]  }
 0x644   : > { %v1426_v16 = vpack.c.bf16 %v1422_v15, %v1422_v15  ;;  %v3300_v15 = vmov 0  }
 0x646   : > { %2602 = vmatmul.mubr.msk.bf16.vlgmr.msra.gmra.mrb[24].mxu1 %vm1379_vm4, %v1426_v16  ;;  %v2870_v16 = vld [vmem:[#allocation16 + $0x40] sm:$0xff]  }
 0x647   : > { %2606 = vmatpush3.bf16.msra.mxu1 %v1431_v17  ;;  %2607 = vmatprep.mubr.msk.bf16.mxu1 %vm3296_vm2, %v3295_v48  ;;  %v2871_v17 = vld [vmem:[#allocation16] sm:$0xff]  }
 0x648   : > { %1871 = vmatprep.subr.bf16.mxu1 %v2848_v61  ;;  %2481 = vmatprep.subr.bf16.mxu0 %v2870_v16  ;;  %v2403_v61 = vld [vmem:[%s4135_s4] ss:$0 sm:$0xff]  ;;  %s3134_s4 = scalar_lea.vmem %s3954_s11, 128 }
 0x649   : > { %v2901_v18 = vpop.eup %2900  ;;  %p3135_p11 = scmp.ne.s32.totalorder %s3954_s11, %s3134_s4 }
 0x64a   : > { %v1423_v19 = vmul.f32 %v2901_v18, %v2893_v0  ;;  %v2854_v0 = vld [vmem:[#allocation15 + $0x24] ss:$8 sps:$4 sm:$0xff]  }
 0x64b   : > { %v2872_v18 = vld [vmem:[#allocation16 + $0x48] sm:$0xff]   ;;  %p3136_p1 = pnand %p3135_p11, %p4140_p12 }
 0x64c   : > { %v1427_v20 = vpack.c.bf16 %v1423_v19, %v1423_v19  ;;  %v2873_v19 = vld [vmem:[#allocation16 + $0x8] sm:$0xff]  }
 0x64d   : > { %p3137_p3 = pneg %p3136_p1 }
 0x64e   : > { %2608 = vmatmul.mubr.msk.bf16.vlgmr.msra.gmra.mrb[28].mxu1 %vm1379_vm4, %v1427_v20  ;;  %v2874_v20 = vld [vmem:[#allocation16 + $0x50] sm:$0xff]  }
 0x64f   : > { %1872 = vmatpush1.bf16.msra.mxu1 %v2846_v60  ;;  %1903 = vmatprep.mubr.bf16.mxu1 %v3300_v15 }
 0x650   : > { %1873 = vmatprep.subr.bf16.mxu1 %v2851_v62 }
 0x653   : > { %1874 = vmatpush1.bf16.msra.mxu1 %v2849_v63 }
 0x654   : > { %1875 = vmatprep.subr.bf16.mxu1 %v2854_v0 }
 0x657   : > { %1876 = vmatpush1.bf16.msra.mxu1 %v2852_v1 }
 0x658   : > { %1877 = vmatprep.subr.bf16.mxu1 %v2857_v6 }
 0x69e   : > { %v1469_v21 = vpop.f32.mrb[16].mxu1 }
 0x69f   : > { %v2591_v22 = vpop.f32.mrb[17].mxu1 }
 0x6a0   : > { %v1472_v23 = vpop.f32.mrb[18].mxu1  ;;  %v2876_v22 = vld [vmem:[#allocation16 + $0x58] sm:$0xff]  }
 0x6a1   : > { %v2592_v24 = vpop.f32.mrb[19].mxu1  ;;  %v2877_v23 = vld [vmem:[#allocation16 + $0x18] sm:$0xff]  }
 0x6a2   : > { %v2878_v24 = vld [vmem:[#allocation16 + $0x60] sm:$0xff]  }
 0x711   : > { %v1512_v32 = vpop.f32.mrb[20].mxu1 }
 0x712   : > { %1605 = vrot.lane.b32.xlu0 %v1512_v32, %s3297_s8  ;;  %v2597_v33 = vpop.f32.mrb[21].mxu1  ;;  %v2385_v32 = vld [vmem:[%s4132_s16] ss:$0 sm:$0xff] }
 0x713   : > { %v1515_v34 = vpop.f32.mrb[22].mxu1 }
 0x714   : > { %v2598_v36 = vpop.f32.mrb[23].mxu1  ;;  %v2386_v34 = vld [vmem:[%s4133_s21] ss:$0 sm:$0xff]  ;;  %s2424_s21 = sshll.u32 %s2132_s19, 7  ;;  %s3140_s19 = scalar_lea.vmem %s3139_s14, 256 }
 0x715   : > { %p3142_p7 = scmp.lt.s32.totalorder %s3140_s19, %s3134_s4 }
 0x717   : > { %p3143_p0 = por %p3142_p7, %p3141_p6 }
 0x719   : > { %v1555_v37 = vpop.f32.mrb[24].mxu1  ;;  %p3144_p4 = pnand %p3143_p0, %p3137_p3 }
 0x71a   : > { %1609 = vrot.lane.b32.xlu1 %v1555_v37, %s3299_s2  ;;  %v2603_v38 = vpop.f32.mrb[25].mxu1  ;;  %s4139_s2 = sld [smem:[#allocation52_spill]] }
 0x71b   : > { %v1558_v39 = vpop.f32.mrb[26].mxu1  ;;  %v2882_v38 = vld [vmem:[#allocation16 + $0x70] sm:$0xff]  }
 0x71c   : > { %v2604_v40 = vpop.f32.mrb[27].mxu1  ;;  %v2883_v39 = vld [vmem:[#allocation16 + $0x30] sm:$0xff]  }
 0x71d   : > { %v2884_v40 = vld [vmem:[#allocation16 + $0x78] sm:$0xff]  }
 0x720   : > { %s3952_s23 = scalar_lea.hbm %s4139_s2, %s2424_s21 }
 0x721   : > { %v1598_v41 = vpop.f32.mrb[28].mxu1 }
 0x722   : > { %1613 = vrot.lane.b32.xlu1 %v1598_v41, %s3298_s25  ;;  %v2609_v42 = vpop.f32.mrb[29].mxu1  ;;  %v2885_v41 = vld [vmem:[#allocation16 + $0x38] sm:$0xff]   ;;  %s4134_s25 = sld [smem:[#allocation47_spill]] }
 0x723   : > { %v1601_v43 = vpop.f32.mrb[30].mxu1  ;;  %v1781_v42 = vlaneseq }
 0x724   : > { %v2610_v44 = vpop.f32.mrb[31].mxu1 }
 0x725   : > { %v1782_v43 = vshrl.u32 %v1781_v42, 7 }
 0x727   : > { %v1783_v44 = vsub.s32 0, %v1782_v43 }
 0x784   : > { %v1606_v45 = vpop.permute.xlu0 %1605 }
 0x785   : > { %v1616_v48 = vsel %vm1194_vm3, %v1469_v21, %v1606_v45  ;;  %v2875_v21 = vld [vmem:[#allocation16 + $0x10] sm:$0xff]   ;;  %v1779_v45 = vld [vmem:[%s4134_s25] sm:$0x3] }
 0x78c   : > { %v1610_v46 = vpop.permute.xlu1 %1609 }
 0x78d   : > { %v1618_v47 = vsel %vm1617_vm5, %v1616_v48, %v1610_v46  ;;  %v1787_v46 = vsub.s32 1, %v1782_v43  ;;  %v1784_v48 = vrot.slane %v1779_v45, %v1783_v44 }
 0x794   : > { %v1614_v49 = vpop.permute.xlu1 %1613 }
 0x795   : > { %v1620_v50 = vsel %vm1619_vm6, %v1618_v47, %v1614_v49  ;;  %v1788_v47 = vrot.slane %v1779_v45, %v1787_v46 }
 0x796   : > { %v1621_v51 = vpack.c.bf16 %v1620_v50, %v1620_v50 }
 0x798   : > { %2628 = vmatmul.mubr.bf16.vlgmr.msra.gmra.mrb[4].mxu0 %v1621_v51 }
 0x799   : > { %2482 = vmatpush3.bf16.msra.mxu0 %v2871_v17 }
 0x79a   : > { %2483 = vmatprep.subr.bf16.mxu0 %v2872_v18 }
 0x79d   : > { %2484 = vmatpush3.bf16.msra.mxu0 %v2873_v19 }
 0x79e   : > { %2485 = vmatprep.subr.bf16.mxu0 %v2874_v20 }
 0x7a1   : > { %2486 = vmatpush3.bf16.msra.mxu0 %v2875_v21 }
 0x7a2   : > { %2487 = vmatprep.subr.bf16.mxu0 %v2876_v22 }
 0x7a5   : > { %2488 = vmatpush3.bf16.msra.mxu0 %v2877_v23 }
 0x7a6   : > { %2489 = vmatprep.subr.bf16.mxu0 %v2878_v24 }
 0x7a9   : > { %2490 = vmatpush3.bf16.msra.mxu0 %v2879_v25 }
 0x7aa   : > { %2491 = vmatprep.subr.bf16.mxu0 %v2880_v26 }
 0x7ad   : > { %2492 = vmatpush3.bf16.msra.mxu0 %v2881_v27 }
 0x7ae   : > { %2493 = vmatprep.subr.bf16.mxu0 %v2882_v38 }
 0x7b1   : > { %2494 = vmatpush3.bf16.msra.mxu0 %v2883_v39 }
 0x7b2   : > { %2495 = vmatprep.subr.bf16.mxu0 %v2884_v40 }
 0x7b5   : > { %2496 = vmatpush3.bf16.msra.mxu0 %v2885_v41 }
 0x86b   : > { %v1727_v53 = vpop.f32.mrb[4].mxu0 }
 0x86c   : > { %v1728_v54 = vadd.f32 %v2376_v52, %v1727_v53  ;;  %v2629_v56 = vpop.f32.mrb[5].mxu0 }
 0x86d   : > { %v1730_v57 = vpop.f32.mrb[6].mxu0 }
 0x86e   : > { %v2630_v58 = vpop.f32.mrb[7].mxu0  ;;  %v1733_v59 = vadd.f32 %v1728_v54, %v3852_v55  ;;  %v2855_v55 = vld [vmem:[#allocation15 + $0x30] ss:$8 sps:$4 sm:$0xff]  }
 0x86f   : > { %1878 = vmatpush1.bf16.msra.mxu1 %v2855_v55 }
 0x870   : > { %1736 = vadd.xlane.f32.xlu0 %v1733_v59  ;;  %1879 = vmatprep.subr.bf16.mxu1 %v2860_v7 }
 0x873   : > { %1880 = vmatpush1.bf16.msra.mxu1 %v2858_v8 }
 0x874   : > { %1881 = vmatprep.subr.bf16.mxu1 %v2863_v9 }
 0x877   : > { %1882 = vmatpush1.bf16.msra.mxu1 %v2861_v10 }
 0x878   : > { %1883 = vmatprep.subr.bf16.mxu1 %v2866_v11  ;;  %v2420_v11 = vld [vmem:[%s4137_s17] ss:$0 sm:$0xff] }
 0x87b   : > { %1884 = vmatpush1.bf16.msra.mxu1 %v2864_v12 }
 0x87c   : > { %1885 = vmatprep.subr.bf16.mxu1 %v2869_v13  ;;  %v2421_v13 = vld [vmem:[%s4138_s9] ss:$0 sm:$0xff] }
 0x87f   : > { %1886 = vmatpush1.bf16.msra.mxu1 %v2867_v14 }
 0x8fd   : > { %v1737_v2 = vpop.xlane.xlu0 %1736 }
 0x8fe   : > { %v1739_v3 = vmul.f32 0.0078125, %v1737_v2 }
 0x900   : > { %v1740_v4 = vsub.f32 %v1733_v59, %v1739_v3 }
 0x902   : > { %v1741_v5 = vmul.f32 %v1740_v4, %v1740_v4 }
 0x904   : > { %1742 = vadd.xlane.f32.xlu1 %v1741_v5 }
 0x991   : > { %v1743_v28 = vpop.xlane.xlu1 %1742 }
 0x992   : > { %v1744_v29 = vmul.f32 0.0078125, %v1743_v28 }
 0x994   : > { %v1745_v30 = vadd.f32 1e-05, %v1744_v29 }
 0x996   : > { %2902 = vrsqrt.f32 %v1745_v30 }
 0x9a0   : > { %v2903_v31 = vpop.eup %2902 }
 0x9a1   : > { %v1747_v33 = vmul.f32 %v2903_v31, %v1740_v4 }
 0x9a3   : > { %v1754_v35 = vmul.f32 %v2385_v32, %v1747_v33 }
 0x9a5   : > { %v1761_v36 = vadd.f32 %v2386_v34, %v1754_v35 }
 0x9a7   : > { %v1762_v37 = vpack.c.bf16 %v1761_v36, %v1761_v36 }
 0x9a9   : > { %1904 = vmatmul.mubr.bf16.vlgmr.msra.gmra.mrb[32].mxu1 %v1762_v37 }
 0xa7c   : > { %v1905_v49 = vpop.f32.mrb[32].mxu1 }
 0xa7d   : > { %v1906_v50 = vadd.f32 %v1905_v49, %v1784_v48  ;;  %v1907_v51 = vpop.f32.mrb[33].mxu1 }
 0xa7e   : > { %v1908_v52 = vadd.f32 %v1907_v51, %v1788_v47  ;;  %v1909_v53 = vpop.f32.mrb[34].mxu1 }
 0xa7f   : > { %v1912_v54 = vmax.f32 %v1906_v50, 0.0  ;;  %v1910_v56 = vpop.f32.mrb[35].mxu1 }
 0xa80   : > { %v1913_v57 = vmax.f32 %v1908_v52, 0.0 }
 0xa81   : > { %v1914_v59 = vpack.c.bf16 %v1912_v54, %v1912_v54 }
 0xa82   : > { %v1915_v58 = vpack.c.bf16 %v1913_v57, %v1913_v57 }
 0xa84   : > { %2083 = vmatprep.mubr.bf16.mxu0 %v1915_v58 }
 0xa85   : > { %2084 = vmatmul.mubr.bf16.vlgmr.msra.gmra.mrb[8].mxu0 %v1914_v59 }
 0xb58   : > { %v2497_v60 = vpop.f32.mrb[8].mxu0 }
 0xb59   : > { %v2498_v62 = vpop.f32.mrb[9].mxu0 }
 0xb5a   : > { %v2499_v63 = vadd.f32 %v2498_v62, %v2497_v60  ;;  %v2500_v0 = vpop.f32.mrb[10].mxu0 }
 0xb5b   : > { %v2501_v1 = vpop.f32.mrb[11].mxu0 }
 0xb5c   : > { %v2086_v2 = vadd.f32 %v2499_v63, %v2403_v61 }
 0xb5e   : > { %v2091_v3 = vadd.f32 %v2086_v2, %v1761_v36 }
 0xb60   : > { %2094 = vadd.xlane.f32.xlu0 %v2091_v3 }
 0xbed   : > { %v2095_v4 = vpop.xlane.xlu0 %2094 }
 0xbee   : > { %v2096_v5 = vmul.f32 0.0078125, %v2095_v4 }
 0xbf0   : > { %v2097_v6 = vsub.f32 %v2091_v3, %v2096_v5 }
 0xbf2   : > { %v2098_v55 = vmul.f32 %v2097_v6, %v2097_v6 }
 0xbf4   : > { %2099 = vadd.xlane.f32.xlu0 %v2098_v55 }
 0xc81   : > { %v2100_v7 = vpop.xlane.xlu0 %2099 }
 0xc82   : > { %v2101_v8 = vmul.f32 0.0078125, %v2100_v7 }
 0xc84   : > { %v2102_v9 = vadd.f32 1e-05, %v2101_v8 }
 0xc86   : > { %2904 = vrsqrt.f32 %v2102_v9 }
 0xc90   : > { %v2905_v10 = vpop.eup %2904 }
 0xc91   : > { %v2104_v12 = vmul.f32 %v2905_v10, %v2097_v6 }
 0xc93   : > { %v2111_v14 = vmul.f32 %v2420_v11, %v2104_v12 }
 0xc95   : > { %v2118_v15 = vadd.f32 %v2421_v13, %v2111_v14 }
 0xc97   : > { %2119 = vst [vmem:[%s772_s5] sm:$0xff] %v2118_v15 }
 0xc98   : > { %3147 = shalt.err (!%p3144_p4)
}
 0xc99   : > { %s3148_s13 = scalar_lea.hbm %s3952_s23, 128  ;;  %s3152_s7 = scalar_lea.hbm %s4139_s2, 512 }
 0xc9a   : > { %p3149_p9 = scmp.ne.s32.totalorder %s3952_s23, %s3148_s13  ;;  %p3153_p10 = scmp.lt.u32.totalorder %s3952_s23, %s4139_s2 }
 0xc9b   : > { %p3154_p8 = scmp.lt.u32.totalorder %s3152_s7, %s3148_s13  ;;  %p3156_p11 = scmp.lt.u32.totalorder %s3148_s13, %s3952_s23 }
 0xc9c   : > { %p3150_p2 = pnand %p3149_p9, %p4140_p12 }
 0xc9d   : > { %p3155_p13 = por %p3154_p8, %p3153_p10 }
 0xc9e   : > { %p3151_p5 = pneg %p3150_p2 }
 0xc9f   : > { %p3157_p1 = por %p3156_p11, %p3155_p13 }
 0xca1   : > { %p3158_p3 = pnand %p3157_p1, %p3151_p5 }
 0xca3   : > { %3161 = shalt.err (!%p3158_p3)
}
 0xca4   : > { %2659 = dma.vmem_to_hbm [thread:$0]  (%p4140_p12), %s3954_s11, 128, %s3952_s23, %s2121_s29  }
 0xca5 PF: > { %s4141_s16 = sld [smem:[#allocation26_spill]]  ;;  %p2704_p6 = scmp.ge.s32.totalorder %s3276_s3, 2 }
 0xca6   : > { %p4142_p7 = scmp.ne.s32.totalorder %s4106_s10, 0 }
 0xca8   : > { %p2688_p0 = pnand %p2704_p6, %p4142_p7 }
 0xcab   : > { %s2148_s26 = sand.u32 1, %s4141_s16  }
 0xcac   : > { %s2149_s9 = scalar_lea.sflag [#allocation6], %s2148_s26 }
 0xcad   : > { %3231 = dma.done.wait (!%p2688_p0), %s2149_s9, 128  }
 0xcae   : > { %3233 = vsyncadd (!%p2688_p0), %s2149_s9, 4294967168  ;;  %s41_s3 = sadd.s32 1, %s3276_s3   ;;  %s4143_s23 = sld [smem:[#allocation29_spill]] }
 0xcaf   : > { %p38_p4 = scmp.ge.s32.totalorder %s41_s3, 6   ;;  %s4144_s27 = sld [smem:[#allocation31_spill]] }
 0xcb0   : > { %s4145_s25 = sld [smem:[#allocation32_spill]]  ;;  %s4146_s0 = smov %s3240_s30 }
 0xcb1   : > { %s4147_s30 = smov %s3244_s20  ;;  %s4148_s20 = smov %s3679_s6 }
 0xcb2   : > { %s4149_s21 = smov %s3252_s1  ;;  %s4150_s1 = smov %s3256_s22 }
 0xcb3   : > { %s4151_s22 = smov %s3676_s28  ;;  %4152 = sst [smem:[#allocation26_spill]] %s3268_s24 }
 0xcb4   :  { %40 = sbr.rel (!%p38_p4) target bundleno = 35 (0x23), region = 193 }
 0xcb5   : > { %s4153_s24 = smov %s4144_s27 }
 0xcbb   :  { %2154 = vsyncpa [#allocation5], 1 }
 0xcbc   :  { %2156 = vsyncpa [#allocation5 + $0x1], 1 }
 0xcbd   :  { %2157 = vsyncpa [#allocation8], 1 }
 0xcbe   :  { %2159 = vsyncpa [#allocation8 + $0x1], 1 }
 0xcbf   :  { %2160 = vsyncpa [#allocation11], 1 }
 0xcc0   :  { %2161 = vsyncpa [#allocation14], 1 }
 0xcc1   :  { %2162 = vsyncpa [#allocation17], 1 }
 0xcc2   :  { %2163 = vsyncpa [#allocation6], 1 }
 0xcc3   :  { %2165 = vsyncpa [#allocation6 + $0x1], 1 }

</bundles_post_ra>
